<compile_context>
chip_gen: v7x
topology: tpu7x:2x2x1
jax: 0.10.0
libtpu: 0.0.40
codegen_flags: <defaults>
</compile_context>

<pallas_src>
import math
import functools

import jax
import jax.numpy as jnp
from jax import lax
from jax.experimental import pallas as pl
from jax.experimental.pallas import tpu as pltpu


def _attn_kernel(n_heads, dk, scale, tq,
                 x_ref, wq_ref, wk_ref, wv_ref, wo_ref,
                 bq_ref, bk_ref, bv_ref, bo_ref,
                 kx_ref, qx_ref,
                 out_ref, ka_sc, v_sc, oacc_sc):
    """One (batch, q-tile) grid step; all heads fused inside."""
    qi = pl.program_id(1)

    # ---- K / V projections + augmented-K build, once per batch element ----
    @pl.when(qi == 0)
    def _():
        x_all = x_ref[0]                                                   # (S, D) bf16
        k = jnp.dot(x_all, wk_ref[...],
                    preferred_element_type=jnp.float32) + bk_ref[...]
        v = jnp.dot(x_all, wv_ref[...],
                    preferred_element_type=jnp.float32) + bv_ref[...]
        v_sc[...] = v.astype(v_sc.dtype)
        k_bf = k.astype(ka_sc.dtype)
        kx = kx_ref[0]                                                     # (S, R+1) bf16
        for h in range(n_heads):
            # [K_h | key-resource one-hot | additive mask], built once per batch.
            ka_sc[h] = jnp.concatenate([k_bf[:, h * dk:(h + 1) * dk], kx], axis=-1)

    # ---- Q projection for this q-tile; fold 1/sqrt(dk) into q ----
    row0 = pl.multiple_of(qi * tq, tq)
    xq = x_ref[0, pl.ds(row0, tq), :]                                      # (tq, D) bf16
    q = jnp.dot(xq, wq_ref[...],
                preferred_element_type=jnp.float32) + bq_ref[...]
    q_bf = (q * scale).astype(jnp.bfloat16)

    # ---- per-head fused score / softmax / PV ----
    for h in range(n_heads):
        sl = slice(h * dk, (h + 1) * dk)
        # [scale*Q_h | gathered bias rows | 1]: one MXU contraction yields
        # scores + resource bias + additive attention mask.
        qa = jnp.concatenate([q_bf[:, sl], qx_ref[0, h]], axis=-1)         # (tq, dk+R+1)
        s = lax.dot_general(qa, ka_sc[h], (((1,), (1,)), ((), ())),
                            preferred_element_type=jnp.float32)            # (tq, S) f32
        # NOTE: fully-masked query rows differ from the reference's degenerate
        # uniform softmax (same caveat as before).
        m = jnp.max(s, axis=-1, keepdims=True)
        p = jnp.exp(s - m)                                                 # f32 softmax math
        denom = jnp.sum(p, axis=-1, keepdims=True)
        # TODO(synk): nn.Dropout(0.1) is a no-op in eval mode; training dropout not implemented.
        ho = jnp.dot(p.astype(jnp.bfloat16), v_sc[:, sl],
                     preferred_element_type=jnp.float32)                   # (tq, dk)
        # Static-slice write -> only one head's output is live in vregs.
        oacc_sc[:, sl] = ho * pl.reciprocal(denom, approx=True)            # EUP divide

    out = jnp.dot(oacc_sc[...].astype(jnp.bfloat16), wo_ref[...],
                  preferred_element_type=jnp.float32) + bo_ref[...]
    out_ref[0] = out.astype(out_ref.dtype)


def _vmem_capacity_bytes():
    """Physical VMEM per TensorCore; falls back to 128 MiB if unavailable."""
    default = 128 * 1024 * 1024
    try:
        info = pltpu.get_tpu_info()
        return int(getattr(info, "vmem_capacity_bytes", default))
    except Exception:
        return default


def resource_aware_attention(x, params, resource_mask, attention_mask,
                             n_heads, resource_types):
    B, S, D = x.shape
    dk = D // n_heads
    R = resource_types
    f32, bf16 = jnp.float32, jnp.bfloat16

    # Per-generation sizing: ~54 MiB scoped VMEM + tq=256 on 64 MiB parts (v7x),
    # ~108 MiB + tq=512 on 128 MiB parts (v5e/v6e).
    vmem_cap = _vmem_capacity_bytes()
    small_vmem = vmem_cap <= 64 * 1024 * 1024
    vmem_limit = int(vmem_cap * 0.85)

    # q-tile: full S for short sequences; otherwise pad S to a 128-multiple and
    # tile with 512/256/128 (never fall back to tq = S).
    if S <= 512:
        tq, Sp = S, S
    else:
        Sp = ((S + 127) // 128) * 128
        pref = 256 if small_vmem else 512
        tq = next(t for t in (pref, 256, 128) if Sp % t == 0)
    nq = Sp // tq
    pad = Sp - S
    # TODO(synk): for very long sequences on 64 MiB-VMEM parts (S*D >~ 8M) the
    # full-S K/V residency should be replaced by a flash-style streamed-KV loop.

    # torch Linear: y = x @ W.T + b — pre-transpose once, store weights bf16.
    wq_t = jnp.asarray(params["Wq"]).T.astype(bf16)
    wk_t = jnp.asarray(params["Wk"]).T.astype(bf16)
    wv_t = jnp.asarray(params["Wv"]).T.astype(bf16)
    wo_t = jnp.asarray(params["Wo"]).T.astype(bf16)
    bq = jnp.asarray(params["bq"]).reshape(1, D).astype(f32)
    bk = jnp.asarray(params["bk"]).reshape(1, D).astype(f32)
    bv = jnp.asarray(params["bv"]).reshape(1, D).astype(f32)
    bo = jnp.asarray(params["bo"]).reshape(1, D).astype(f32)

    x_in = x.astype(bf16)
    rm = resource_mask.astype(jnp.int32)
    am = attention_mask
    if pad:
        x_in = jnp.pad(x_in, ((0, 0), (0, pad), (0, 0)))
        rm = jnp.pad(rm, ((0, 0), (0, pad)), constant_values=-1)   # invalid -> zero bias
        am = jnp.pad(am, ((0, 0), (0, pad)))                       # 0 -> masked-out keys

    # Q-side augmentation: resource-bias rows gathered by query resource id,
    # plus a ones column that picks up the key-side additive-mask column.
    valid = (rm >= 0) & (rm < R)
    rm_c = jnp.clip(rm, 0, R - 1)
    rb = jnp.asarray(params["rbias"]).astype(f32)                      # (H, R, R)
    rb_rows = rb[:, rm_c, :]                                           # (H, B, Sp, R)
    rb_rows = jnp.where(valid[None, :, :, None], rb_rows, 0.0)
    rb_rows = jnp.transpose(rb_rows, (1, 0, 2, 3))                     # (B, H, Sp, R)
    qx = jnp.concatenate(
        [rb_rows, jnp.ones((B, n_heads, Sp, 1), f32)], axis=-1).astype(bf16)

    # K-side augmentation: key-resource one-hot plus the additive attention mask
    # (matches torch's masked_fill(mask == 0, -1e9) for any mask values).
    onehot = ((rm[:, :, None] == jnp.arange(R)[None, None, :])
              & valid[:, :, None]).astype(f32)                         # (B, Sp, R)
    madd = jnp.where(am == 0, -1e9, 0.0).astype(f32)[..., None]        # (B, Sp, 1)
    kx = jnp.concatenate([onehot, madd], axis=-1).astype(bf16)         # (B, Sp, R+1)

    kernel = functools.partial(_attn_kernel, n_heads, dk, 1.0 / math.sqrt(dk), tq)

    out = pl.pallas_call(
        kernel,
        out_shape=jax.ShapeDtypeStruct((B, Sp, D), x.dtype),
        grid_spec=pltpu.PrefetchScalarGridSpec(
            num_scalar_prefetch=0,
            grid=(B, nq),
            in_specs=[
                pl.BlockSpec((1, Sp, D), lambda b, qi: (b, 0, 0)),      # x (resident over qi)
                # Constant-index weight/bias blocks are DMA'd only once by the
                # pipeline (their index map never changes); their buffers are
                # budgeted by the per-chip vmem_limit below.
                pl.BlockSpec((D, D), lambda b, qi: (0, 0)),             # WqT
                pl.BlockSpec((D, D), lambda b, qi: (0, 0)),             # WkT
                pl.BlockSpec((D, D), lambda b, qi: (0, 0)),             # WvT
                pl.BlockSpec((D, D), lambda b, qi: (0, 0)),             # WoT
                pl.BlockSpec((1, D), lambda b, qi: (0, 0)),             # bq
                pl.BlockSpec((1, D), lambda b, qi: (0, 0)),             # bk
                pl.BlockSpec((1, D), lambda b, qi: (0, 0)),             # bv
                pl.BlockSpec((1, D), lambda b, qi: (0, 0)),             # bo
                pl.BlockSpec((1, Sp, R + 1), lambda b, qi: (b, 0, 0)),  # [one-hot | mask]
                pl.BlockSpec((1, n_heads, tq, R + 1),
                             lambda b, qi: (b, 0, qi, 0)),              # [bias rows | 1]
            ],
            out_specs=pl.BlockSpec((1, tq, D), lambda b, qi: (b, qi, 0)),
            scratch_shapes=[
                pltpu.VMEM((n_heads, Sp, dk + R + 1), bf16),  # augmented K per head
                pltpu.VMEM((Sp, D), bf16),                    # V cache
                pltpu.VMEM((tq, D), f32),                     # head outputs (pre-Wo)
            ],
        ),
        compiler_params=pltpu.CompilerParams(
            dimension_semantics=("parallel", "arbitrary"),
            vmem_limit_bytes=vmem_limit),
    )(x_in, wq_t, wk_t, wv_t, wo_t, bq, bk, bv, bo, kx, qx)
    return out[:, :S, :] if pad else out


def ref_forward(x, params, rm, am, n_heads, resource_types):
    """Pure-JAX f32 reference mirroring the PyTorch forward (eval mode)."""
    B, S, D = x.shape
    dk = D // n_heads

    def lin(z, W, b):
        return z @ W.T + b

    Q = lin(x, params["Wq"], params["bq"]).reshape(B, S, n_heads, dk).transpose(0, 2, 1, 3)
    K = lin(x, params["Wk"], params["bk"]).reshape(B, S, n_heads, dk).transpose(0, 2, 1, 3)
    V = lin(x, params["Wv"], params["bv"]).reshape(B, S, n_heads, dk).transpose(0, 2, 1, 3)
    scores = jnp.einsum("bhid,bhjd->bhij", Q, K) / math.sqrt(dk)
    rb = params["rbias"]                                            # (H, R, R)
    bias = rb[:, rm[:, :, None], rm[:, None, :]]                    # (H, B, S, S)
    scores = scores + jnp.transpose(bias, (1, 0, 2, 3))
    scores = jnp.where(am[:, None, None, :] == 0, -1e9, scores)
    attn = jax.nn.softmax(scores, axis=-1)
    out = jnp.einsum("bhij,bhjd->bhid", attn, V)
    out = out.transpose(0, 2, 1, 3).reshape(B, S, D)
    return lin(out, params["Wo"], params["bo"])


if __name__ == "__main__":
    B, S = 2, 8
    d_model, n_heads, resource_types = 32, 4, 5

    key = jax.random.PRNGKey(0)
    ks = jax.random.split(key, 12)
    params = {
        "Wq": jax.random.normal(ks[0], (d_model, d_model), jnp.float32) * 0.1,
        "bq": jax.random.normal(ks[1], (d_model,), jnp.float32) * 0.1,
        "Wk": jax.random.normal(ks[2], (d_model, d_model), jnp.float32) * 0.1,
        "bk": jax.random.normal(ks[3], (d_model,), jnp.float32) * 0.1,
        "Wv": jax.random.normal(ks[4], (d_model, d_model), jnp.float32) * 0.1,
        "bv": jax.random.normal(ks[5], (d_model,), jnp.float32) * 0.1,
        "Wo": jax.random.normal(ks[6], (d_model, d_model), jnp.float32) * 0.1,
        "bo": jax.random.normal(ks[7], (d_model,), jnp.float32) * 0.1,
        "rbias": jax.random.normal(ks[8], (n_heads, resource_types, resource_types),
                                   jnp.float32),
    }

    x = jax.random.normal(ks[9], (B, S, d_model), jnp.float32)
    resource_mask = jax.random.randint(ks[10], (B, S), 0, resource_types, jnp.int32)
    attention_mask = jnp.ones((B, S), jnp.float32).at[0, -1].set(0.0)

    out = resource_aware_attention(x, params, resource_mask, attention_mask,
                                   n_heads, resource_types)
    out = jax.block_until_ready(out)

    ref = ref_forward(x, params, resource_mask, attention_mask,
                      n_heads, resource_types)
    assert out.shape == (B, S, d_model)
    # bf16 MXU operands (x, weights, q/k/v, bias rows, p) + approx reciprocal ->
    # slightly looser tolerance vs the f32 reference.
    assert jnp.allclose(out, ref, atol=2e-2, rtol=2e-2), "mismatch vs reference"
    print("KERNEL_OK")
</pallas_src>

<mosaic_0001>
module attributes {stable_mosaic.version = 11 : i64} {
  func.func @_attn_kernel(%arg0: i32, %arg1: i32, %arg2: memref<1x8x32xbf16, #tpu.memory_space<vmem>>, %arg3: memref<32x32xbf16, #tpu.memory_space<vmem>>, %arg4: memref<32x32xbf16, #tpu.memory_space<vmem>>, %arg5: memref<32x32xbf16, #tpu.memory_space<vmem>>, %arg6: memref<32x32xbf16, #tpu.memory_space<vmem>>, %arg7: memref<1x32xf32, #tpu.memory_space<vmem>>, %arg8: memref<1x32xf32, #tpu.memory_space<vmem>>, %arg9: memref<1x32xf32, #tpu.memory_space<vmem>>, %arg10: memref<1x32xf32, #tpu.memory_space<vmem>>, %arg11: memref<1x8x6xbf16, #tpu.memory_space<vmem>>, %arg12: memref<1x4x8x6xbf16, #tpu.memory_space<vmem>>, %arg13: memref<1x8x32xf32, #tpu.memory_space<vmem>>, %arg14: memref<4x8x14xbf16, #tpu.memory_space<vmem>>, %arg15: memref<8x32xbf16, #tpu.memory_space<vmem>>, %arg16: memref<8x32xf32, #tpu.memory_space<vmem>>) attributes {dimension_semantics = [#tpu.dimension_semantics<parallel>, #tpu.dimension_semantics<arbitrary>], iteration_bounds = array<i64: 2, 1>, scalar_prefetch = 0 : i64, scratch_operands = 3 : i64, tpu.core_type = #tpu.core_type<tc>, window_params = [{transform_indices = @transform_0, window_bounds = array<i64: 1, 8, 32>}, {pipeline_mode = #tpu.pipeline_mode<synchronous>, transform_indices = @transform_1, window_bounds = array<i64: 32, 32>}, {pipeline_mode = #tpu.pipeline_mode<synchronous>, transform_indices = @transform_2, window_bounds = array<i64: 32, 32>}, {pipeline_mode = #tpu.pipeline_mode<synchronous>, transform_indices = @transform_3, window_bounds = array<i64: 32, 32>}, {pipeline_mode = #tpu.pipeline_mode<synchronous>, transform_indices = @transform_4, window_bounds = array<i64: 32, 32>}, {pipeline_mode = #tpu.pipeline_mode<synchronous>, transform_indices = @transform_5, window_bounds = array<i64: 1, 32>}, {pipeline_mode = #tpu.pipeline_mode<synchronous>, transform_indices = @transform_6, window_bounds = array<i64: 1, 32>}, {pipeline_mode = #tpu.pipeline_mode<synchronous>, transform_indices = @transform_7, window_bounds = array<i64: 1, 32>}, {pipeline_mode = #tpu.pipeline_mode<synchronous>, transform_indices = @transform_8, window_bounds = array<i64: 1, 32>}, {transform_indices = @transform_9, window_bounds = array<i64: 1, 8, 6>}, {transform_indices = @transform_10, window_bounds = array<i64: 1, 4, 8, 6>}, {transform_indices = @transform_11, window_bounds = array<i64: 1, 8, 32>}]} {
    %c0_i32 = arith.constant 0 : i32
    %0 = arith.cmpi eq, %arg1, %c0_i32 : i32
    %1 = arith.extui %0 : i1 to i32
    %c0_i32_0 = arith.constant 0 : i32
    %2 = arith.cmpi ne, %1, %c0_i32_0 : i32
    scf.if %2 {
      %c0_71 = arith.constant 0 : index
      %c0_72 = arith.constant 0 : index
      %c0_73 = arith.constant 0 : index
      %110 = vector.load %arg2[%c0_71, %c0_72, %c0_73] : memref<1x8x32xbf16, #tpu.memory_space<vmem>>, vector<1x8x32xbf16>
      %111 = vector.shape_cast %110 : vector<1x8x32xbf16> to vector<8x32xbf16>
      %c0_74 = arith.constant 0 : index
      %c0_75 = arith.constant 0 : index
      %112 = vector.load %arg4[%c0_74, %c0_75] : memref<32x32xbf16, #tpu.memory_space<vmem>>, vector<32x32xbf16>
      %cst_76 = arith.constant dense<0.000000e+00> : vector<8x32xf32>
      %113 = tpu.matmul %111, %112, %cst_76 {dimension_numbers = #tpu.dot_dimension_numbers<[1], [0], [0], [1], [0, 0, 1, 1], [], []>} : vector<8x32xbf16>, vector<32x32xbf16>, vector<8x32xf32> -> vector<8x32xf32>
      %c0_77 = arith.constant 0 : index
      %c0_78 = arith.constant 0 : index
      %114 = vector.load %arg8[%c0_77, %c0_78] : memref<1x32xf32, #tpu.memory_space<vmem>>, vector<1x32xf32>
      %115 = vector.broadcast %114 : vector<1x32xf32> to vector<8x32xf32>
      %116 = arith.addf %113, %115 : vector<8x32xf32>
      %c0_79 = arith.constant 0 : index
      %c0_80 = arith.constant 0 : index
      %117 = vector.load %arg5[%c0_79, %c0_80] : memref<32x32xbf16, #tpu.memory_space<vmem>>, vector<32x32xbf16>
      %cst_81 = arith.constant dense<0.000000e+00> : vector<8x32xf32>
      %118 = tpu.matmul %111, %117, %cst_81 {dimension_numbers = #tpu.dot_dimension_numbers<[1], [0], [0], [1], [0, 0, 1, 1], [], []>} : vector<8x32xbf16>, vector<32x32xbf16>, vector<8x32xf32> -> vector<8x32xf32>
      %c0_82 = arith.constant 0 : index
      %c0_83 = arith.constant 0 : index
      %119 = vector.load %arg9[%c0_82, %c0_83] : memref<1x32xf32, #tpu.memory_space<vmem>>, vector<1x32xf32>
      %120 = vector.broadcast %119 : vector<1x32xf32> to vector<8x32xf32>
      %121 = arith.addf %118, %120 : vector<8x32xf32>
      %122 = arith.truncf %121 : vector<8x32xf32> to vector<8x32xbf16>
      %c0_84 = arith.constant 0 : index
      %c0_85 = arith.constant 0 : index
      %123 = vector.load %arg15[%c0_84, %c0_85] : memref<8x32xbf16, #tpu.memory_space<vmem>>, vector<8x32xbf16>
      tpu.vector_store %arg15[%c0_84, %c0_85], %122 {strides = array<i32>} : memref<8x32xbf16, #tpu.memory_space<vmem>>, vector<8x32xbf16>,
      %124 = arith.truncf %116 : vector<8x32xf32> to vector<8x32xbf16>
      %c0_86 = arith.constant 0 : index
      %c0_87 = arith.constant 0 : index
      %c0_88 = arith.constant 0 : index
      %125 = vector.load %arg11[%c0_86, %c0_87, %c0_88] : memref<1x8x6xbf16, #tpu.memory_space<vmem>>, vector<1x8x6xbf16>
      %126 = vector.shape_cast %125 : vector<1x8x6xbf16> to vector<8x6xbf16>
      %127 = vector.extract_strided_slice %124 {offsets = [0, 0], sizes = [8, 8], strides = [1, 1]} : vector<8x32xbf16> to vector<8x8xbf16>
      %128 = tpu.concatenate %127, %126 in 1 : vector<8x8xbf16>, vector<8x6xbf16> -> vector<8x14xbf16>
      %c0_89 = arith.constant 0 : index
      %c0_90 = arith.constant 0 : index
      %c0_91 = arith.constant 0 : index
      %129 = vector.load %arg14[%c0_89, %c0_90, %c0_91] : memref<4x8x14xbf16, #tpu.memory_space<vmem>>, vector<1x8x14xbf16>
      %130 = vector.shape_cast %129 : vector<1x8x14xbf16> to vector<8x14xbf16>
      %131 = vector.shape_cast %128 : vector<8x14xbf16> to vector<1x8x14xbf16>
      tpu.vector_store %arg14[%c0_89, %c0_90, %c0_91], %131 {strides = array<i32>} : memref<4x8x14xbf16, #tpu.memory_space<vmem>>, vector<1x8x14xbf16>,
      %132 = vector.extract_strided_slice %124 {offsets = [0, 8], sizes = [8, 8], strides = [1, 1]} : vector<8x32xbf16> to vector<8x8xbf16>
      %133 = tpu.concatenate %132, %126 in 1 : vector<8x8xbf16>, vector<8x6xbf16> -> vector<8x14xbf16>
      %c1_92 = arith.constant 1 : index
      %c0_93 = arith.constant 0 : index
      %c0_94 = arith.constant 0 : index
      %134 = vector.load %arg14[%c1_92, %c0_93, %c0_94] : memref<4x8x14xbf16, #tpu.memory_space<vmem>>, vector<1x8x14xbf16>
      %135 = vector.shape_cast %134 : vector<1x8x14xbf16> to vector<8x14xbf16>
      %136 = vector.shape_cast %133 : vector<8x14xbf16> to vector<1x8x14xbf16>
      tpu.vector_store %arg14[%c1_92, %c0_93, %c0_94], %136 {strides = array<i32>} : memref<4x8x14xbf16, #tpu.memory_space<vmem>>, vector<1x8x14xbf16>,
      %137 = vector.extract_strided_slice %124 {offsets = [0, 16], sizes = [8, 8], strides = [1, 1]} : vector<8x32xbf16> to vector<8x8xbf16>
      %138 = tpu.concatenate %137, %126 in 1 : vector<8x8xbf16>, vector<8x6xbf16> -> vector<8x14xbf16>
      %c2_95 = arith.constant 2 : index
      %c0_96 = arith.constant 0 : index
      %c0_97 = arith.constant 0 : index
      %139 = vector.load %arg14[%c2_95, %c0_96, %c0_97] : memref<4x8x14xbf16, #tpu.memory_space<vmem>>, vector<1x8x14xbf16>
      %140 = vector.shape_cast %139 : vector<1x8x14xbf16> to vector<8x14xbf16>
      %141 = vector.shape_cast %138 : vector<8x14xbf16> to vector<1x8x14xbf16>
      tpu.vector_store %arg14[%c2_95, %c0_96, %c0_97], %141 {strides = array<i32>} : memref<4x8x14xbf16, #tpu.memory_space<vmem>>, vector<1x8x14xbf16>,
      %142 = vector.extract_strided_slice %124 {offsets = [0, 24], sizes = [8, 8], strides = [1, 1]} : vector<8x32xbf16> to vector<8x8xbf16>
      %143 = tpu.concatenate %142, %126 in 1 : vector<8x8xbf16>, vector<8x6xbf16> -> vector<8x14xbf16>
      %c3_98 = arith.constant 3 : index
      %c0_99 = arith.constant 0 : index
      %c0_100 = arith.constant 0 : index
      %144 = vector.load %arg14[%c3_98, %c0_99, %c0_100] : memref<4x8x14xbf16, #tpu.memory_space<vmem>>, vector<1x8x14xbf16>
      %145 = vector.shape_cast %144 : vector<1x8x14xbf16> to vector<8x14xbf16>
      %146 = vector.shape_cast %143 : vector<8x14xbf16> to vector<1x8x14xbf16>
      tpu.vector_store %arg14[%c3_98, %c0_99, %c0_100], %146 {strides = array<i32>} : memref<4x8x14xbf16, #tpu.memory_space<vmem>>, vector<1x8x14xbf16>,
    } else {
    }
    %c8_i32 = arith.constant 8 : i32
    %3 = arith.muli %arg1, %c8_i32 : i32
    %4 = tpu.assume_multiple %3, 8 : i32
    %c0 = arith.constant 0 : index
    %5 = arith.index_cast %4 : i32 to index
    %c0_1 = arith.constant 0 : index
    %6 = vector.load %arg2[%c0, %5, %c0_1] : memref<1x8x32xbf16, #tpu.memory_space<vmem>>, vector<1x8x32xbf16>
    %7 = vector.shape_cast %6 : vector<1x8x32xbf16> to vector<8x32xbf16>
    %c0_2 = arith.constant 0 : index
    %c0_3 = arith.constant 0 : index
    %8 = vector.load %arg3[%c0_2, %c0_3] : memref<32x32xbf16, #tpu.memory_space<vmem>>, vector<32x32xbf16>
    %cst = arith.constant dense<0.000000e+00> : vector<8x32xf32>
    %9 = tpu.matmul %7, %8, %cst {dimension_numbers = #tpu.dot_dimension_numbers<[1], [0], [0], [1], [0, 0, 1, 1], [], []>} : vector<8x32xbf16>, vector<32x32xbf16>, vector<8x32xf32> -> vector<8x32xf32>
    %c0_4 = arith.constant 0 : index
    %c0_5 = arith.constant 0 : index
    %10 = vector.load %arg7[%c0_4, %c0_5] : memref<1x32xf32, #tpu.memory_space<vmem>>, vector<1x32xf32>
    %11 = vector.broadcast %10 : vector<1x32xf32> to vector<8x32xf32>
    %12 = arith.addf %9, %11 : vector<8x32xf32>
    %cst_6 = arith.constant 0.353553385 : f32
    %13 = vector.broadcast %cst_6 : f32 to vector<8x32xf32>
    %14 = arith.mulf %12, %13 : vector<8x32xf32>
    %15 = arith.truncf %14 : vector<8x32xf32> to vector<8x32xbf16>
    %16 = vector.extract_strided_slice %15 {offsets = [0, 0], sizes = [8, 8], strides = [1, 1]} : vector<8x32xbf16> to vector<8x8xbf16>
    %c0_7 = arith.constant 0 : index
    %c0_8 = arith.constant 0 : index
    %c0_9 = arith.constant 0 : index
    %c0_10 = arith.constant 0 : index
    %17 = vector.load %arg12[%c0_7, %c0_8, %c0_9, %c0_10] : memref<1x4x8x6xbf16, #tpu.memory_space<vmem>>, vector<1x1x8x6xbf16>
    %18 = vector.shape_cast %17 : vector<1x1x8x6xbf16> to vector<8x6xbf16>
    %19 = tpu.concatenate %16, %18 in 1 : vector<8x8xbf16>, vector<8x6xbf16> -> vector<8x14xbf16>
    %c0_11 = arith.constant 0 : index
    %c0_12 = arith.constant 0 : index
    %c0_13 = arith.constant 0 : index
    %20 = vector.load %arg14[%c0_11, %c0_12, %c0_13] : memref<4x8x14xbf16, #tpu.memory_space<vmem>>, vector<1x8x14xbf16>
    %21 = vector.shape_cast %20 : vector<1x8x14xbf16> to vector<8x14xbf16>
    %cst_14 = arith.constant dense<0.000000e+00> : vector<8x8xf32>
    %22 = tpu.matmul %19, %21, %cst_14 {dimension_numbers = #tpu.dot_dimension_numbers<[1], [1], [0], [0], [0, 0, 1, 0], [], []>} : vector<8x14xbf16>, vector<8x14xbf16>, vector<8x8xf32> -> vector<8x8xf32>
    %cst_15 = arith.constant dense<0xFF800000> : vector<8xf32>
    %23 = vector.multi_reduction <maximumf>, %22, %cst_15 [1] : vector<8x8xf32> to vector<8xf32>
    %24 = vector.shape_cast %23 : vector<8xf32> to vector<8x1xf32>
    %25 = vector.broadcast %24 : vector<8x1xf32> to vector<8x8xf32>
    %26 = arith.subf %22, %25 : vector<8x8xf32>
    %27 = math.exp %26 : vector<8x8xf32>
    %cst_16 = arith.constant dense<0.000000e+00> : vector<8xf32>
    %28 = vector.multi_reduction <add>, %27, %cst_16 [1] : vector<8x8xf32> to vector<8xf32>
    %29 = vector.shape_cast %28 : vector<8xf32> to vector<8x1xf32>
    %30 = arith.truncf %27 : vector<8x8xf32> to vector<8x8xbf16>
    %c0_17 = arith.constant 0 : index
    %c0_18 = arith.constant 0 : index
    %31 = vector.load %arg15[%c0_17, %c0_18] : memref<8x32xbf16, #tpu.memory_space<vmem>>, vector<8x8xbf16>
    %cst_19 = arith.constant dense<0.000000e+00> : vector<8x8xf32>
    %32 = tpu.matmul %30, %31, %cst_19 {dimension_numbers = #tpu.dot_dimension_numbers<[1], [0], [0], [1], [0, 0, 1, 1], [], []>} : vector<8x8xbf16>, vector<8x8xbf16>, vector<8x8xf32> -> vector<8x8xf32>
    %33 = tpu.reciprocal %29 {approx = true} : vector<8x1xf32> -> vector<8x1xf32>
    %34 = vector.broadcast %33 : vector<8x1xf32> to vector<8x8xf32>
    %35 = arith.mulf %32, %34 : vector<8x8xf32>
    %c0_20 = arith.constant 0 : index
    %c0_21 = arith.constant 0 : index
    %36 = vector.load %arg16[%c0_20, %c0_21] : memref<8x32xf32, #tpu.memory_space<vmem>>, vector<8x8xf32>
    tpu.vector_store %arg16[%c0_20, %c0_21], %35 {strides = array<i32>} : memref<8x32xf32, #tpu.memory_space<vmem>>, vector<8x8xf32>,
    %37 = vector.extract_strided_slice %15 {offsets = [0, 8], sizes = [8, 8], strides = [1, 1]} : vector<8x32xbf16> to vector<8x8xbf16>
    %c0_22 = arith.constant 0 : index
    %c1 = arith.constant 1 : index
    %c0_23 = arith.constant 0 : index
    %c0_24 = arith.constant 0 : index
    %38 = vector.load %arg12[%c0_22, %c1, %c0_23, %c0_24] : memref<1x4x8x6xbf16, #tpu.memory_space<vmem>>, vector<1x1x8x6xbf16>
    %39 = vector.shape_cast %38 : vector<1x1x8x6xbf16> to vector<8x6xbf16>
    %40 = tpu.concatenate %37, %39 in 1 : vector<8x8xbf16>, vector<8x6xbf16> -> vector<8x14xbf16>
    %c1_25 = arith.constant 1 : index
    %c0_26 = arith.constant 0 : index
    %c0_27 = arith.constant 0 : index
    %41 = vector.load %arg14[%c1_25, %c0_26, %c0_27] : memref<4x8x14xbf16, #tpu.memory_space<vmem>>, vector<1x8x14xbf16>
    %42 = vector.shape_cast %41 : vector<1x8x14xbf16> to vector<8x14xbf16>
    %cst_28 = arith.constant dense<0.000000e+00> : vector<8x8xf32>
    %43 = tpu.matmul %40, %42, %cst_28 {dimension_numbers = #tpu.dot_dimension_numbers<[1], [1], [0], [0], [0, 0, 1, 0], [], []>} : vector<8x14xbf16>, vector<8x14xbf16>, vector<8x8xf32> -> vector<8x8xf32>
    %cst_29 = arith.constant dense<0xFF800000> : vector<8xf32>
    %44 = vector.multi_reduction <maximumf>, %43, %cst_29 [1] : vector<8x8xf32> to vector<8xf32>
    %45 = vector.shape_cast %44 : vector<8xf32> to vector<8x1xf32>
    %46 = vector.broadcast %45 : vector<8x1xf32> to vector<8x8xf32>
    %47 = arith.subf %43, %46 : vector<8x8xf32>
    %48 = math.exp %47 : vector<8x8xf32>
    %cst_30 = arith.constant dense<0.000000e+00> : vector<8xf32>
    %49 = vector.multi_reduction <add>, %48, %cst_30 [1] : vector<8x8xf32> to vector<8xf32>
    %50 = vector.shape_cast %49 : vector<8xf32> to vector<8x1xf32>
    %51 = arith.truncf %48 : vector<8x8xf32> to vector<8x8xbf16>
    %c0_31 = arith.constant 0 : index
    %c8 = arith.constant 8 : index
    %52 = vector.load %arg15[%c0_31, %c8] : memref<8x32xbf16, #tpu.memory_space<vmem>>, vector<8x8xbf16>
    %cst_32 = arith.constant dense<0.000000e+00> : vector<8x8xf32>
    %53 = tpu.matmul %51, %52, %cst_32 {dimension_numbers = #tpu.dot_dimension_numbers<[1], [0], [0], [1], [0, 0, 1, 1], [], []>} : vector<8x8xbf16>, vector<8x8xbf16>, vector<8x8xf32> -> vector<8x8xf32>
    %54 = tpu.reciprocal %50 {approx = true} : vector<8x1xf32> -> vector<8x1xf32>
    %55 = vector.broadcast %54 : vector<8x1xf32> to vector<8x8xf32>
    %56 = arith.mulf %53, %55 : vector<8x8xf32>
    %c0_33 = arith.constant 0 : index
    %c8_34 = arith.constant 8 : index
    %57 = vector.load %arg16[%c0_33, %c8_34] : memref<8x32xf32, #tpu.memory_space<vmem>>, vector<8x8xf32>
    tpu.vector_store %arg16[%c0_33, %c8_34], %56 {strides = array<i32>} : memref<8x32xf32, #tpu.memory_space<vmem>>, vector<8x8xf32>,
    %58 = vector.extract_strided_slice %15 {offsets = [0, 16], sizes = [8, 8], strides = [1, 1]} : vector<8x32xbf16> to vector<8x8xbf16>
    %c0_35 = arith.constant 0 : index
    %c2 = arith.constant 2 : index
    %c0_36 = arith.constant 0 : index
    %c0_37 = arith.constant 0 : index
    %59 = vector.load %arg12[%c0_35, %c2, %c0_36, %c0_37] : memref<1x4x8x6xbf16, #tpu.memory_space<vmem>>, vector<1x1x8x6xbf16>
    %60 = vector.shape_cast %59 : vector<1x1x8x6xbf16> to vector<8x6xbf16>
    %61 = tpu.concatenate %58, %60 in 1 : vector<8x8xbf16>, vector<8x6xbf16> -> vector<8x14xbf16>
    %c2_38 = arith.constant 2 : index
    %c0_39 = arith.constant 0 : index
    %c0_40 = arith.constant 0 : index
    %62 = vector.load %arg14[%c2_38, %c0_39, %c0_40] : memref<4x8x14xbf16, #tpu.memory_space<vmem>>, vector<1x8x14xbf16>
    %63 = vector.shape_cast %62 : vector<1x8x14xbf16> to vector<8x14xbf16>
    %cst_41 = arith.constant dense<0.000000e+00> : vector<8x8xf32>
    %64 = tpu.matmul %61, %63, %cst_41 {dimension_numbers = #tpu.dot_dimension_numbers<[1], [1], [0], [0], [0, 0, 1, 0], [], []>} : vector<8x14xbf16>, vector<8x14xbf16>, vector<8x8xf32> -> vector<8x8xf32>
    %cst_42 = arith.constant dense<0xFF800000> : vector<8xf32>
    %65 = vector.multi_reduction <maximumf>, %64, %cst_42 [1] : vector<8x8xf32> to vector<8xf32>
    %66 = vector.shape_cast %65 : vector<8xf32> to vector<8x1xf32>
    %67 = vector.broadcast %66 : vector<8x1xf32> to vector<8x8xf32>
    %68 = arith.subf %64, %67 : vector<8x8xf32>
    %69 = math.exp %68 : vector<8x8xf32>
    %cst_43 = arith.constant dense<0.000000e+00> : vector<8xf32>
    %70 = vector.multi_reduction <add>, %69, %cst_43 [1] : vector<8x8xf32> to vector<8xf32>
    %71 = vector.shape_cast %70 : vector<8xf32> to vector<8x1xf32>
    %72 = arith.truncf %69 : vector<8x8xf32> to vector<8x8xbf16>
    %c0_44 = arith.constant 0 : index
    %c16 = arith.constant 16 : index
    %73 = vector.load %arg15[%c0_44, %c16] : memref<8x32xbf16, #tpu.memory_space<vmem>>, vector<8x8xbf16>
    %cst_45 = arith.constant dense<0.000000e+00> : vector<8x8xf32>
    %74 = tpu.matmul %72, %73, %cst_45 {dimension_numbers = #tpu.dot_dimension_numbers<[1], [0], [0], [1], [0, 0, 1, 1], [], []>} : vector<8x8xbf16>, vector<8x8xbf16>, vector<8x8xf32> -> vector<8x8xf32>
    %75 = tpu.reciprocal %71 {approx = true} : vector<8x1xf32> -> vector<8x1xf32>
    %76 = vector.broadcast %75 : vector<8x1xf32> to vector<8x8xf32>
    %77 = arith.mulf %74, %76 : vector<8x8xf32>
    %c0_46 = arith.constant 0 : index
    %c16_47 = arith.constant 16 : index
    %78 = vector.load %arg16[%c0_46, %c16_47] : memref<8x32xf32, #tpu.memory_space<vmem>>, vector<8x8xf32>
    tpu.vector_store %arg16[%c0_46, %c16_47], %77 {strides = array<i32>} : memref<8x32xf32, #tpu.memory_space<vmem>>, vector<8x8xf32>,
    %79 = vector.extract_strided_slice %15 {offsets = [0, 24], sizes = [8, 8], strides = [1, 1]} : vector<8x32xbf16> to vector<8x8xbf16>
    %c0_48 = arith.constant 0 : index
    %c3 = arith.constant 3 : index
    %c0_49 = arith.constant 0 : index
    %c0_50 = arith.constant 0 : index
    %80 = vector.load %arg12[%c0_48, %c3, %c0_49, %c0_50] : memref<1x4x8x6xbf16, #tpu.memory_space<vmem>>, vector<1x1x8x6xbf16>
    %81 = vector.shape_cast %80 : vector<1x1x8x6xbf16> to vector<8x6xbf16>
    %82 = tpu.concatenate %79, %81 in 1 : vector<8x8xbf16>, vector<8x6xbf16> -> vector<8x14xbf16>
    %c3_51 = arith.constant 3 : index
    %c0_52 = arith.constant 0 : index
    %c0_53 = arith.constant 0 : index
    %83 = vector.load %arg14[%c3_51, %c0_52, %c0_53] : memref<4x8x14xbf16, #tpu.memory_space<vmem>>, vector<1x8x14xbf16>
    %84 = vector.shape_cast %83 : vector<1x8x14xbf16> to vector<8x14xbf16>
    %cst_54 = arith.constant dense<0.000000e+00> : vector<8x8xf32>
    %85 = tpu.matmul %82, %84, %cst_54 {dimension_numbers = #tpu.dot_dimension_numbers<[1], [1], [0], [0], [0, 0, 1, 0], [], []>} : vector<8x14xbf16>, vector<8x14xbf16>, vector<8x8xf32> -> vector<8x8xf32>
    %cst_55 = arith.constant dense<0xFF800000> : vector<8xf32>
    %86 = vector.multi_reduction <maximumf>, %85, %cst_55 [1] : vector<8x8xf32> to vector<8xf32>
    %87 = vector.shape_cast %86 : vector<8xf32> to vector<8x1xf32>
    %88 = vector.broadcast %87 : vector<8x1xf32> to vector<8x8xf32>
    %89 = arith.subf %85, %88 : vector<8x8xf32>
    %90 = math.exp %89 : vector<8x8xf32>
    %cst_56 = arith.constant dense<0.000000e+00> : vector<8xf32>
    %91 = vector.multi_reduction <add>, %90, %cst_56 [1] : vector<8x8xf32> to vector<8xf32>
    %92 = vector.shape_cast %91 : vector<8xf32> to vector<8x1xf32>
    %93 = arith.truncf %90 : vector<8x8xf32> to vector<8x8xbf16>
    %c0_57 = arith.constant 0 : index
    %c24 = arith.constant 24 : index
    %94 = vector.load %arg15[%c0_57, %c24] : memref<8x32xbf16, #tpu.memory_space<vmem>>, vector<8x8xbf16>
    %cst_58 = arith.constant dense<0.000000e+00> : vector<8x8xf32>
    %95 = tpu.matmul %93, %94, %cst_58 {dimension_numbers = #tpu.dot_dimension_numbers<[1], [0], [0], [1], [0, 0, 1, 1], [], []>} : vector<8x8xbf16>, vector<8x8xbf16>, vector<8x8xf32> -> vector<8x8xf32>
    %96 = tpu.reciprocal %92 {approx = true} : vector<8x1xf32> -> vector<8x1xf32>
    %97 = vector.broadcast %96 : vector<8x1xf32> to vector<8x8xf32>
    %98 = arith.mulf %95, %97 : vector<8x8xf32>
    %c0_59 = arith.constant 0 : index
    %c24_60 = arith.constant 24 : index
    %99 = vector.load %arg16[%c0_59, %c24_60] : memref<8x32xf32, #tpu.memory_space<vmem>>, vector<8x8xf32>
    tpu.vector_store %arg16[%c0_59, %c24_60], %98 {strides = array<i32>} : memref<8x32xf32, #tpu.memory_space<vmem>>, vector<8x8xf32>,
    %c0_61 = arith.constant 0 : index
    %c0_62 = arith.constant 0 : index
    %100 = vector.load %arg16[%c0_61, %c0_62] : memref<8x32xf32, #tpu.memory_space<vmem>>, vector<8x32xf32>
    %101 = arith.truncf %100 : vector<8x32xf32> to vector<8x32xbf16>
    %c0_63 = arith.constant 0 : index
    %c0_64 = arith.constant 0 : index
    %102 = vector.load %arg6[%c0_63, %c0_64] : memref<32x32xbf16, #tpu.memory_space<vmem>>, vector<32x32xbf16>
    %cst_65 = arith.constant dense<0.000000e+00> : vector<8x32xf32>
    %103 = tpu.matmul %101, %102, %cst_65 {dimension_numbers = #tpu.dot_dimension_numbers<[1], [0], [0], [1], [0, 0, 1, 1], [], []>} : vector<8x32xbf16>, vector<32x32xbf16>, vector<8x32xf32> -> vector<8x32xf32>
    %c0_66 = arith.constant 0 : index
    %c0_67 = arith.constant 0 : index
    %104 = vector.load %arg10[%c0_66, %c0_67] : memref<1x32xf32, #tpu.memory_space<vmem>>, vector<1x32xf32>
    %105 = vector.broadcast %104 : vector<1x32xf32> to vector<8x32xf32>
    %106 = arith.addf %103, %105 : vector<8x32xf32>
    %c0_68 = arith.constant 0 : index
    %c0_69 = arith.constant 0 : index
    %c0_70 = arith.constant 0 : index
    %107 = vector.load %arg13[%c0_68, %c0_69, %c0_70] : memref<1x8x32xf32, #tpu.memory_space<vmem>>, vector<1x8x32xf32>
    %108 = vector.shape_cast %107 : vector<1x8x32xf32> to vector<8x32xf32>
    %109 = vector.shape_cast %106 : vector<8x32xf32> to vector<1x8x32xf32>
    tpu.vector_store %arg13[%c0_68, %c0_69, %c0_70], %109 {strides = array<i32>} : memref<1x8x32xf32, #tpu.memory_space<vmem>>, vector<1x8x32xf32>,
    return
  }
  func.func @transform_0(%arg0: i32, %arg1: i32) -> (i32, i32, i32) {
    %c0_i32 = arith.constant 0 : i32
    %c0_i32_0 = arith.constant 0 : i32
    %c0_i32_1 = arith.constant 0 : i32
    return %arg0, %c0_i32, %c0_i32_0 : i32, i32, i32
  }
  func.func @transform_1(%arg0: i32, %arg1: i32) -> (i32, i32) {
    %c0_i32 = arith.constant 0 : i32
    %c0_i32_0 = arith.constant 0 : i32
    %c0_i32_1 = arith.constant 0 : i32
    return %c0_i32, %c0_i32_0 : i32, i32
  }
  func.func @transform_2(%arg0: i32, %arg1: i32) -> (i32, i32) {
    %c0_i32 = arith.constant 0 : i32
    %c0_i32_0 = arith.constant 0 : i32
    %c0_i32_1 = arith.constant 0 : i32
    return %c0_i32, %c0_i32_0 : i32, i32
  }
  func.func @transform_3(%arg0: i32, %arg1: i32) -> (i32, i32) {
    %c0_i32 = arith.constant 0 : i32
    %c0_i32_0 = arith.constant 0 : i32
    %c0_i32_1 = arith.constant 0 : i32
    return %c0_i32, %c0_i32_0 : i32, i32
  }
  func.func @transform_4(%arg0: i32, %arg1: i32) -> (i32, i32) {
    %c0_i32 = arith.constant 0 : i32
    %c0_i32_0 = arith.constant 0 : i32
    %c0_i32_1 = arith.constant 0 : i32
    return %c0_i32, %c0_i32_0 : i32, i32
  }
  func.func @transform_5(%arg0: i32, %arg1: i32) -> (i32, i32) {
    %c0_i32 = arith.constant 0 : i32
    %c0_i32_0 = arith.constant 0 : i32
    %c0_i32_1 = arith.constant 0 : i32
    return %c0_i32, %c0_i32_0 : i32, i32
  }
  func.func @transform_6(%arg0: i32, %arg1: i32) -> (i32, i32) {
    %c0_i32 = arith.constant 0 : i32
    %c0_i32_0 = arith.constant 0 : i32
    %c0_i32_1 = arith.constant 0 : i32
    return %c0_i32, %c0_i32_0 : i32, i32
  }
  func.func @transform_7(%arg0: i32, %arg1: i32) -> (i32, i32) {
    %c0_i32 = arith.constant 0 : i32
    %c0_i32_0 = arith.constant 0 : i32
    %c0_i32_1 = arith.constant 0 : i32
    return %c0_i32, %c0_i32_0 : i32, i32
  }
  func.func @transform_8(%arg0: i32, %arg1: i32) -> (i32, i32) {
    %c0_i32 = arith.constant 0 : i32
    %c0_i32_0 = arith.constant 0 : i32
    %c0_i32_1 = arith.constant 0 : i32
    return %c0_i32, %c0_i32_0 : i32, i32
  }
  func.func @transform_9(%arg0: i32, %arg1: i32) -> (i32, i32, i32) {
    %c0_i32 = arith.constant 0 : i32
    %c0_i32_0 = arith.constant 0 : i32
    %c0_i32_1 = arith.constant 0 : i32
    return %arg0, %c0_i32, %c0_i32_0 : i32, i32, i32
  }
  func.func @transform_10(%arg0: i32, %arg1: i32) -> (i32, i32, i32, i32) {
    %c0_i32 = arith.constant 0 : i32
    %c0_i32_0 = arith.constant 0 : i32
    %c0_i32_1 = arith.constant 0 : i32
    return %arg0, %c0_i32, %arg1, %c0_i32_0 : i32, i32, i32, i32
  }
  func.func @transform_11(%arg0: i32, %arg1: i32) -> (i32, i32, i32) {
    %c0_i32 = arith.constant 0 : i32
    %c0_i32_0 = arith.constant 0 : i32
    return %arg0, %arg1, %c0_i32 : i32, i32, i32
  }
}

</mosaic_0001>

<bundles_post_ra>
// kernel: tpu_custom_call.1
= control target key start
LH: loop header
LB: loop body
LE: loop exit
PB: predicated region body
PF: predicated region fallthrough
CT: control target
= control target key end

     0   :  { %s3105_s0 = inlined_call_operand.hbm [shape: bf16[2,8,32], index: 0, kind: input, shape index: {}]   ;;  %s3106_s1 = inlined_call_operand.hbm [shape: bf16[32,32], index: 1, kind: input, shape index: {}]   ;;  %s3107_s2 = inlined_call_operand.hbm [shape: bf16[32,32], index: 2, kind: input, shape index: {}]   ;;  %s3108_s3 = inlined_call_operand.hbm [shape: bf16[32,32], index: 3, kind: input, shape index: {}]   ;;  %s3109_s4 = inlined_call_operand.hbm [shape: bf16[32,32], index: 4, kind: input, shape index: {}]   ;;  %s3110_s5 = inlined_call_operand.hbm [shape: f32[1,32], index: 5, kind: input, shape index: {}]   ;;  %s3111_s6 = inlined_call_operand.hbm [shape: f32[1,32], index: 6, kind: input, shape index: {}]   ;;  %s3112_s7 = inlined_call_operand.hbm [shape: f32[1,32], index: 7, kind: input, shape index: {}]   ;;  %s3113_s8 = inlined_call_operand.hbm [shape: f32[1,32], index: 8, kind: input, shape index: {}]   ;;  %s3114_s9 = inlined_call_operand.hbm [shape: bf16[2,8,6], index: 9, kind: input, shape index: {}]   ;;  %s3115_s10 = inlined_call_operand.hbm [shape: bf16[2,4,8,6], index: 10, kind: input, shape index: {}]   ;;  %s3116_s11 = inlined_call_operand.hbm [shape: f32[2,8,32], index: 11, kind: output, shape index: {}]  }
   0x1   :  { %3145 = sst [smem:[#allocation39_spill]] %s3106_s1 }
   0x2   :  { %3146 = sst [smem:[#allocation40_spill]] %s3107_s2 }
   0x3   :  { %3147 = sst [smem:[#allocation41_spill]] %s3108_s3 }
   0x4   :  { %3148 = sst [smem:[#allocation42_spill]] %s3109_s4 }
   0x5   :  { %3149 = sst [smem:[#allocation43_spill]] %s3110_s5 }
   0x6   :  { %3150 = sst [smem:[#allocation44_spill]] %s3112_s7 }
   0x7   :  { %3151 = sst [smem:[#allocation45_spill]] %s3113_s8 }
   0x8   :  { %3152 = sst [smem:[#allocation46_spill]] %s3114_s9 }
   0x9   :  { %3153 = sst [smem:[#allocation47_spill]] %s3115_s10 }
   0xa   :  { %3154 = sst [smem:[#allocation48_spill]] %s3116_s11 }
   0xb   :  { %16 = vsyncpa [#allocation6], 0 }
   0xc   :  { %18 = vsyncpa [#allocation6 + $0x1], 0 }
   0xd   :  { %19 = vsyncpa [#allocation9], 0 }
   0xe   :  { %20 = vsyncpa [#allocation12], 0 }
   0xf   :  { %21 = vsyncpa [#allocation15], 0 }
  0x10   :  { %22 = vsyncpa [#allocation18], 0 }
  0x11   :  { %23 = vsyncpa [#allocation21], 0 }
  0x12   :  { %25 = vsyncpa [#allocation21 + $0x1], 0 }
  0x13   :  { %26 = vsyncpa [#allocation7], 0 }
  0x14   :  { %28 = vsyncpa [#allocation7 + $0x1], 0  ;;  %s2518_s17 = smov 0   ;;  %s2520_s18 = smov 0  }
  0x15   :  { %s2522_s19 = smov 0   ;;  %s2524_s20 = smov 0  }
  0x16   :  { %s2526_s21 = smov 0   ;;  %s2528_s22 = smov 0  }
  0x17 LB: > { %3155 = sst [smem:[#allocation31_spill]] %s2414_s17  ;;  %s2549_s23 = sadd.s32 4294967295, %s2434_s22   ;;  %s2434_s22 = sphi %s2528_s22, %s34_s22   ;;  %s2430_s21 = sphi %s2526_s21, %s3216_s21   ;;  %s2426_s20 = sphi %s2524_s20, %s3215_s20   ;;  %s2422_s19 = sphi %s2522_s19, %s3214_s19   ;;  %s2418_s18 = sphi %s2520_s18, %s3213_s18   ;;  %s2414_s17 = sphi %s2518_s17, %s3212_s17  }
  0x18   : > { %3156 = sst [smem:[#allocation32_spill]] %s2422_s19  ;;  %p1645_p0 = scmp.ge.s32.totalorder %s2434_s22, 1 }
  0x19   : > { %3157 = sst [smem:[#allocation33_spill]] %s2426_s20  ;;  %p3121_p1 = scmp.eq.s32.totalorder %s2549_s23, 0 }
  0x1a   : > { %3158 = sst [smem:[#allocation34_spill]] %s2434_s22  ;;  %p327_p2 = scmp.lt.s32.totalorder %s2434_s22, 3 }
  0x1b   : > { %s2436_s25 = smov [#allocation8]   ;;  %s2437_s28 = smov [#allocation11]  }
  0x1c   : > { %p2554_p3 = pnand %p1645_p0, %p327_p2  ;;  %s339_s26 = sshll.u32 %s2436_s25, 4  ;;  %s2558_s26 = int_to_ptr.vmem [resolvable:$true] %s339_s26 }
  0x1d   : > { %s365_s29 = sshll.u32 %s2437_s28, 4  ;;  %s2438_s30 = smov [#allocation14]   ;;  %s2569_s29 = int_to_ptr.vmem [resolvable:$true] %s365_s29 }
  0x1e   : > { %s3159_s24 = scalar_select %p2554_p3, 1, 0 }
  0x1f   : > { %p1863_p4 = pneg %p2554_p3  ;;  %s2571_s12 = sshll.u32 %s2438_s30, 4  ;;  %s393_s12 = int_to_ptr.vmem [resolvable:$true] %s2571_s12 }
  0x20   : > { %3160 = sst [smem:[#allocation35_spill]] %s3159_s24 }
  0x21   : > { %p2565_p6 = pnand %p1863_p4, %p3121_p1  ;;  %s3162_s1 = sld [smem:[#allocation39_spill]] }
  0x23   : > { %s3161_s27 = scalar_select %p2565_p6, 1, 0 }
  0x24   : > { %p2581_p8 = pneg %p2565_p6 }
  0x26   : > { %s3163_s11 = scalar_select %p2581_p8, 1, 0 }
  0x27   : > { %s2018_s15 = scalar_lea.hbm %s3162_s1, 256 }
  0x28   : > { %p2019_p7 = scmp.ne.s32.totalorder %s3162_s1, %s2018_s15  ;;  %p2025_p11 = scmp.lt.u32.totalorder %s2018_s15, %s3162_s1 }
  0x2a   : > { %p2021_p9 = pnand %p2581_p8, %p2019_p7 }
  0x2c   : > { %p2022_p10 = pneg %p2021_p9 }
  0x2e   : > { %p2027_p12 = pnand %p2025_p11, %p2022_p10 }
  0x30   : > { %2030 = shalt.err (!%p2027_p12)
}
  0x31   : > { %s2031_s13 = scalar_lea.vmem %s2558_s26, 256  ;;  %p2039_p4 = scmp.lt.s32.totalorder %s2558_s26, %s2558_s26 }
  0x32   : > { %p2032_p13 = scmp.ne.s32.totalorder %s2558_s26, %s2031_s13  ;;  %p2040_p5 = scmp.lt.s32.totalorder %s2031_s13, %s2031_s13 }
  0x34   : > { %p2034_p0 = pnand %p2032_p13, %p2581_p8  ;;  %p2041_p7 = por %p2040_p5, %p2039_p4 }
  0x36   : > { %p2035_p2 = pneg %p2034_p0 }
  0x38   : > { %p2042_p9 = pnand %p2041_p7, %p2035_p2 }
  0x3a   : > { %2045 = shalt.err (!%p2042_p9)
}
  0x3b   : > { %s3123_s14 = smov 64   ;;  %s3125_s15 = smov 4  }
  0x3c   : > { %1866 = dma.hbm_to_vmem [thread:$0]  (!%p2565_p6), %s3162_s1, 256, %s2558_s26, [#allocation9], %s3123_s14, %s3123_s14, %s3125_s15  }
  0x3d   : > { %s3164_s3 = sld [smem:[#allocation41_spill]] }
  0x43   : > { %s2046_s13 = scalar_lea.hbm %s3164_s3, 256 }
  0x44   : > { %p2047_p5 = scmp.ne.s32.totalorder %s3164_s3, %s2046_s13  ;;  %p2053_p12 = scmp.lt.u32.totalorder %s2046_s13, %s3164_s3 }
  0x46   : > { %p2049_p10 = pnand %p2047_p5, %p2581_p8 }
  0x48   : > { %p2050_p11 = pneg %p2049_p10 }
  0x4a   : > { %p2055_p13 = pnand %p2053_p12, %p2050_p11 }
  0x4c   : > { %2058 = shalt.err (!%p2055_p13)
}
  0x4d   : > { %s2059_s26 = scalar_lea.vmem %s2569_s29, 256  ;;  %p2067_p7 = scmp.lt.s32.totalorder %s2569_s29, %s2569_s29 }
  0x4e   : > { %p2060_p0 = scmp.ne.s32.totalorder %s2569_s29, %s2059_s26  ;;  %p2068_p9 = scmp.lt.s32.totalorder %s2059_s26, %s2059_s26 }
  0x50   : > { %p2062_p2 = pnand %p2060_p0, %p2581_p8  ;;  %p2069_p5 = por %p2068_p9, %p2067_p7 }
  0x52   : > { %p2063_p4 = pneg %p2062_p2 }
  0x54   : > { %p2070_p10 = pnand %p2069_p5, %p2063_p4 }
  0x56   : > { %2073 = shalt.err (!%p2070_p10)
}
  0x57   : > { %1872 = dma.hbm_to_vmem [thread:$0]  (!%p2565_p6), %s3164_s3, 256, %s2569_s29, [#allocation12], %s3123_s14, %s3123_s14, %s3125_s15  }
  0x58   : > { %s3165_s5 = sld [smem:[#allocation43_spill]] }
  0x5e   : > { %s2074_s16 = scalar_lea.hbm %s3165_s5, 16 }
  0x5f   : > { %p2075_p11 = scmp.ne.s32.totalorder %s3165_s5, %s2074_s16  ;;  %p2081_p0 = scmp.lt.u32.totalorder %s2074_s16, %s3165_s5 }
  0x61   : > { %p2077_p12 = pnand %p2075_p11, %p2581_p8 }
  0x63   : > { %p2078_p13 = pneg %p2077_p12 }
  0x65   : > { %p2083_p2 = pnand %p2081_p0, %p2078_p13 }
  0x67   : > { %2086 = shalt.err (!%p2083_p2)
}
  0x68   : > { %s2087_s26 = scalar_lea.vmem %s393_s12, 16  ;;  %s2094_s29 = scalar_lea.vmem %s393_s12, 32 }
  0x69   : > { %p2088_p4 = scmp.ne.s32.totalorder %s393_s12, %s2087_s26  ;;  %p2095_p5 = scmp.lt.s32.totalorder %s393_s12, %s393_s12 }
  0x6a   : > { %p2096_p10 = scmp.lt.s32.totalorder %s2094_s29, %s2087_s26 }
  0x6b   : > { %p2090_p7 = pnand %p2088_p4, %p2581_p8 }
  0x6c   : > { %p2097_p1 = por %p2096_p10, %p2095_p5 }
  0x6d   : > { %p2091_p9 = pneg %p2090_p7 }
  0x6f   : > { %p2098_p3 = pnand %p2097_p1, %p2091_p9 }
  0x71   : > { %2101 = shalt.err (!%p2098_p3)
}
  0x72   : > { %1878 = dma.hbm_to_vmem [thread:$0]  (!%p2565_p6), %s3165_s5, 16, %s393_s12, [#allocation15]  }
  0x73   : > { %s2441_s20 = smov [#allocation17]   ;;  %s3166_s7 = sld [smem:[#allocation44_spill]] }
  0x74   : > { %s414_s24 = sshll.u32 %s2441_s20, 4  ;;  %s415_s24 = int_to_ptr.vmem [resolvable:$true] %s414_s24 }
  0x79   : > { %s2102_s28 = scalar_lea.hbm %s3166_s7, 16 }
  0x7a   : > { %p2103_p11 = scmp.ne.s32.totalorder %s3166_s7, %s2102_s28  ;;  %p2109_p12 = scmp.lt.u32.totalorder %s2102_s28, %s3166_s7 }
  0x7c   : > { %p2105_p1 = pnand %p2103_p11, %p2581_p8 }
  0x7e   : > { %p2106_p3 = pneg %p2105_p1 }
  0x80   : > { %p2111_p13 = pnand %p2109_p12, %p2106_p3 }
  0x82   : > { %2114 = shalt.err (!%p2111_p13)
}
  0x83   : > { %s2115_s12 = scalar_lea.vmem %s415_s24, 16  ;;  %s2122_s8 = scalar_lea.vmem %s415_s24, 32 }
  0x84   : > { %p2116_p0 = scmp.ne.s32.totalorder %s415_s24, %s2115_s12  ;;  %p2123_p7 = scmp.lt.s32.totalorder %s415_s24, %s415_s24 }
  0x85   : > { %p2124_p9 = scmp.lt.s32.totalorder %s2122_s8, %s2115_s12 }
  0x86   : > { %p2118_p2 = pnand %p2116_p0, %p2581_p8 }
  0x87   : > { %p2125_p5 = por %p2124_p9, %p2123_p7 }
  0x88   : > { %p2119_p4 = pneg %p2118_p2 }
  0x8a   : > { %p2126_p10 = pnand %p2125_p5, %p2119_p4 }
  0x8c   : > { %2129 = shalt.err (!%p2126_p10)
}
  0x8d   : > { %1884 = dma.hbm_to_vmem [thread:$0]  (!%p2565_p6), %s3166_s7, 16, %s415_s24, [#allocation18]  }
  0x8e   : > { %s1644_s16 = sadd.s32 4294967294, %s2434_s22   ;;  %s46_s25 = sadd.s32 1, %s2430_s21 }
  0x8f   : > { %p48_p11 = scmp.ge.s32.totalorder %s46_s25, 2  ;;  %s53_s28 = sadd.s32 1, %s2422_s19 }
  0x90   : > { %p60_p1 = scmp.ne.s32.totalorder %s2422_s19, %s2418_s18  ;;  %p61_p3 = scmp.eq.s32.totalorder %s2434_s22, 0 }
  0x91   : > { %s3218_s25 = smov (%p48_p11, %s46_s25), 0  ;;  %p66_p13 = scmp.ne.s32.totalorder %s2418_s18, %s2414_s17 }
  0x92   : > { %3167 = sst [smem:[#allocation36_spill]] %s3218_s25  ;;  %p2676_p12 = por %p61_p3, %p60_p1 }
  0x93   : > { %s50_s24 = ssub.s32 %s2430_s21, %s3218_s25  ;;  %p314_p0 = scmp.eq.s32.totalorder %s2549_s23, 1 }
  0x94   : > { %p51_p2 = scmp.eq.s32.totalorder %s50_s24, 0  ;;  %p3169_p4 = scmp.eq.s32.totalorder %s2549_s23, 0 }
  0x95   : > { %p2691_p9 = por %p314_p0, %p60_p1  ;;  %p320_p5 = scmp.eq.s32.totalorder %s1644_s16, 1 }
  0x96   : > { %p2687_p7 = por %p3169_p4, %p66_p13  ;;  %p1910_p11 = scmp.lt.s32.totalorder %s2434_s22, 2 }
  0x97   : > { %s3171_s26 = scalar_select %p2691_p9, 1, 0 }
  0x98   : > { %s3170_s13 = scalar_select %p2687_p7, 1, 0 }
  0x99   : > { %s2696_s29 = scalar_select %p51_p2, %s2422_s19, %s53_s28  }
  0x9a   : > { %p2698_p10 = por %p320_p5, %p66_p13  ;;  %s2704_s8 = sand.u32 1, %s2422_s19  }
  0x9b   : > { %3172 = sst [smem:[#allocation37_spill]] %s2696_s29  ;;  %s3129_s10 = sshll.u32 %s2430_s21, 6 }
  0x9c   : > { %s3173_s12 = scalar_select %p2698_p10, 1, 0 }
  0x9d   : > { %s3128_s20 = sshll.u32 %s2704_s8, 2  ;;  %p2710_p1 = pnand %p1910_p11, %p2676_p12 }
  0x9e   : > { %3174 = sst [smem:[#allocation38_spill]] %s3173_s12  ;;  %s454_s16 = sand.u32 1, %s2434_s22  }
  0x9f   : > { %s3175_s24 = scalar_select %p2710_p1, 1, 0 }
  0xa0   : > { %s3176_s9 = sld [smem:[#allocation46_spill]]  ;;  %s458_s1 = scalar_lea.vmem [#allocation20], %s3128_s20 }
  0xa1   : > { %s465_s3 = sshll.u32 %s458_s1, 4  ;;  %s1659_s30 = sshll.u32 %s2704_s8, 4  ;;  %s2724_s3 = int_to_ptr.vmem [resolvable:$true] %s465_s3 }
  0xa2   : > { %s2727_s5 = scalar_lea.sflag [#allocation21], %s454_s16  ;;  %p2733_p12 = pneg %p2710_p1 }
  0xa4   : > { %s3177_s25 = scalar_select %p2733_p12, 1, 0 }
  0xa6   : > { %s2720_s15 = scalar_lea.hbm %s3176_s9, %s3129_s10  ;;  %s2135_s1 = scalar_lea.hbm %s3176_s9, 128 }
  0xa7   : > { %s2130_s7 = scalar_lea.hbm %s2720_s15, 64  ;;  %p2136_p2 = scmp.lt.u32.totalorder %s2720_s15, %s3176_s9 }
  0xa8   : > { %p2131_p3 = scmp.ne.s32.totalorder %s2720_s15, %s2130_s7  ;;  %p2137_p4 = scmp.lt.u32.totalorder %s2135_s1, %s2130_s7 }
  0xa9   : > { %p2139_p11 = scmp.lt.u32.totalorder %s2130_s7, %s2720_s15 }
  0xaa   : > { %p2133_p13 = pnand %p2733_p12, %p2131_p3  ;;  %p2138_p5 = por %p2137_p4, %p2136_p2 }
  0xac   : > { %p2134_p0 = pneg %p2133_p13  ;;  %p2140_p10 = por %p2139_p11, %p2138_p5 }
  0xae   : > { %p2141_p9 = pnand %p2140_p10, %p2134_p0 }
  0xb0   : > { %2144 = shalt.err (!%p2141_p9)
}
  0xb1   : > { %s2145_s16 = scalar_lea.vmem %s2724_s3, 64  ;;  %s2442_s14 = smov [#allocation20]  }
  0xb2   : > { %p2146_p3 = scmp.ne.s32.totalorder %s2724_s3, %s2145_s16  ;;  %s2150_s28 = sshll.u32 %s2442_s14, 4  ;;  %s2151_s28 = int_to_ptr.vmem [resolvable:$false] %s2150_s28 }
  0xb3   : > { %s2152_s10 = scalar_lea.vmem %s2151_s28, 128  ;;  %p2153_p6 = scmp.lt.s32.totalorder %s2724_s3, %s2151_s28 }
  0xb4   : > { %p2148_p13 = pnand %p2146_p3, %p2733_p12  ;;  %p2154_p8 = scmp.lt.s32.totalorder %s2152_s10, %s2145_s16 }
  0xb6   : > { %p2149_p7 = pneg %p2148_p13  ;;  %p2155_p2 = por %p2154_p8, %p2153_p6 }
  0xb8   : > { %p2156_p4 = pnand %p2155_p2, %p2149_p7 }
  0xba   : > { %2159 = shalt.err (!%p2156_p4)
}
  0xbb   : > { %1894 = dma.hbm_to_vmem [thread:$0]  (!%p2710_p1), %s2720_s15, 64, %s2724_s3, %s2727_s5  }
  0xbc   : > { %s476_s7 = scalar_lea.vmem [#allocation22], %s1659_s30  ;;  %s2443_s1 = smov [#allocation10]  }
  0xbd   : > { %s484_s20 = sshll.u32 %s476_s7, 4  ;;  %s352_s14 = sshll.u32 %s2443_s1, 4  ;;  %s2759_s20 = int_to_ptr.vmem [resolvable:$true] %s484_s20  ;;  %s353_s14 = int_to_ptr.vmem [resolvable:$true] %s352_s14 }
  0xbe   : > { %s3178_s2 = sld [smem:[#allocation40_spill]]  ;;  %p3179_p8 = scmp.ne.s32.totalorder %s3163_s11, 0 }
  0xc4   : > { %s2160_s10 = scalar_lea.hbm %s3178_s2, 256 }
  0xc5   : > { %p2161_p6 = scmp.ne.s32.totalorder %s3178_s2, %s2160_s10  ;;  %p2167_p10 = scmp.lt.u32.totalorder %s2160_s10, %s3178_s2 }
  0xc7   : > { %p2163_p7 = pnand %p2161_p6, %p3179_p8 }
  0xc9   : > { %p2164_p9 = pneg %p2163_p7 }
  0xcb   : > { %p2169_p0 = pnand %p2167_p10, %p2164_p9 }
  0xcd   : > { %2172 = shalt.err (!%p2169_p0)
}
  0xce   : > { %s2173_s30 = scalar_lea.vmem %s353_s14, 256  ;;  %p2181_p13 = scmp.lt.s32.totalorder %s353_s14, %s353_s14 }
  0xcf   : > { %p2174_p5 = scmp.ne.s32.totalorder %s353_s14, %s2173_s30  ;;  %p2182_p2 = scmp.lt.s32.totalorder %s2173_s30, %s2173_s30 }
  0xd1   : > { %p2176_p11 = pnand %p2174_p5, %p3179_p8  ;;  %p2183_p4 = por %p2182_p2, %p2181_p13 }
  0xd3   : > { %p2177_p3 = pneg %p2176_p11 }
  0xd5   : > { %p2184_p1 = pnand %p2183_p4, %p2177_p3 }
  0xd7   : > { %2187 = shalt.err (!%p2184_p1)
}
  0xd8   : > { %p3180_p6 = scmp.ne.s32.totalorder %s3161_s27, 0  ;;  %s3181_s9 = smov 4  }
  0xd9   : > { %s3182_s29 = smov 64   ;;  %s2444_s16 = smov [#allocation13]  }
  0xda   : > { %1869 = dma.hbm_to_vmem [thread:$0]  (!%p3180_p6), %s3178_s2, 256, %s353_s14, [#allocation9], %s3182_s29, %s3182_s29, %s3181_s9  }
  0xdb   : > { %s378_s28 = sshll.u32 %s2444_s16, 4  ;;  %s2445_s10 = smov [#allocation16]   ;;  %s379_s28 = int_to_ptr.vmem [resolvable:$true] %s378_s28 }
  0xdc   : > { %s403_s3 = sshll.u32 %s2445_s10, 4  ;;  %s3183_s4 = sld [smem:[#allocation42_spill]]  ;;  %s2782_s3 = int_to_ptr.vmem [resolvable:$true] %s403_s3 }
  0xe2   : > { %s2188_s19 = scalar_lea.hbm %s3183_s4, 256 }
  0xe3   : > { %p2189_p1 = scmp.ne.s32.totalorder %s3183_s4, %s2188_s19  ;;  %p2195_p10 = scmp.lt.u32.totalorder %s2188_s19, %s3183_s4 }
  0xe5   : > { %p2191_p7 = pnand %p2189_p1, %p3179_p8 }
  0xe7   : > { %p2192_p9 = pneg %p2191_p7 }
  0xe9   : > { %p2197_p0 = pnand %p2195_p10, %p2192_p9 }
  0xeb   : > { %2200 = shalt.err (!%p2197_p0)
}
  0xec   : > { %s2201_s1 = scalar_lea.vmem %s379_s28, 256  ;;  %p2209_p13 = scmp.lt.s32.totalorder %s379_s28, %s379_s28 }
  0xed   : > { %p2202_p5 = scmp.ne.s32.totalorder %s379_s28, %s2201_s1  ;;  %p2210_p2 = scmp.lt.s32.totalorder %s2201_s1, %s2201_s1 }
  0xef   : > { %p2204_p11 = pnand %p2202_p5, %p3179_p8  ;;  %p2211_p4 = por %p2210_p2, %p2209_p13 }
  0xf1   : > { %p2205_p3 = pneg %p2204_p11 }
  0xf3   : > { %p2212_p12 = pnand %p2211_p4, %p2205_p3 }
  0xf5   : > { %2215 = shalt.err (!%p2212_p12)
}
  0xf6   : > { %1875 = dma.hbm_to_vmem [thread:$0]  (!%p3180_p6), %s3183_s4, 256, %s379_s28, [#allocation12], %s3182_s29, %s3182_s29, %s3181_s9  }
  0xf7   : > { %s2216_s10 = scalar_lea.hbm %s3111_s6, 16 }
  0xf8   : > { %p2217_p1 = scmp.ne.s32.totalorder %s3111_s6, %s2216_s10  ;;  %p2223_p9 = scmp.lt.u32.totalorder %s2216_s10, %s3111_s6 }
  0xfa   : > { %p2219_p12 = pnand %p2217_p1, %p3179_p8 }
  0xfc   : > { %p2220_p7 = pneg %p2219_p12 }
  0xfe   : > { %p2225_p10 = pnand %p2223_p9, %p2220_p7 }
 0x100   : > { %2228 = shalt.err (!%p2225_p10)
}
 0x101   : > { %s2229_s28 = scalar_lea.vmem %s2782_s3, 16  ;;  %s2236_s1 = scalar_lea.vmem %s2782_s3, 32 }
 0x102   : > { %p2230_p0 = scmp.ne.s32.totalorder %s2782_s3, %s2229_s28  ;;  %p2237_p3 = scmp.lt.s32.totalorder %s2782_s3, %s2782_s3 }
 0x103   : > { %p2238_p13 = scmp.lt.s32.totalorder %s2236_s1, %s2229_s28 }
 0x104   : > { %p2232_p5 = pnand %p2230_p0, %p3179_p8 }
 0x105   : > { %p2239_p2 = por %p2238_p13, %p2237_p3 }
 0x106   : > { %p2233_p11 = pneg %p2232_p5 }
 0x108   : > { %p2240_p4 = pnand %p2239_p2, %p2233_p11 }
 0x10a   : > { %2243 = shalt.err (!%p2240_p4)
}
 0x10b   : > { %1881 = dma.hbm_to_vmem [thread:$0]  (!%p3180_p6), %s3111_s6, 16, %s2782_s3, [#allocation15]  }
 0x10c   : > { %s2446_s12 = smov [#allocation19]   ;;  %s3184_s10 = sshll.u32 %s2430_s21, 6 }
 0x10d   : > { %s425_s16 = sshll.u32 %s2446_s12, 4  ;;  %s2834_s7 = scalar_lea.hbm %s3105_s0, %s3184_s10  ;;  %s426_s16 = int_to_ptr.vmem [resolvable:$true] %s425_s16 }
 0x10e   : > { %s3185_s1 = sld [smem:[#allocation45_spill]] }
 0x114   : > { %s2244_s2 = scalar_lea.hbm %s3185_s1, 16 }
 0x115   : > { %p2245_p1 = scmp.ne.s32.totalorder %s3185_s1, %s2244_s2  ;;  %p2251_p9 = scmp.lt.u32.totalorder %s2244_s2, %s3185_s1 }
 0x117   : > { %p2247_p12 = pnand %p2245_p1, %p3179_p8 }
 0x119   : > { %p2248_p7 = pneg %p2247_p12 }
 0x11b   : > { %p2253_p10 = pnand %p2251_p9, %p2248_p7 }
 0x11d   : > { %2256 = shalt.err (!%p2253_p10)
}
 0x11e   : > { %s2257_s19 = scalar_lea.vmem %s426_s16, 16  ;;  %s2264_s12 = scalar_lea.vmem %s426_s16, 32 }
 0x11f   : > { %p2258_p0 = scmp.ne.s32.totalorder %s426_s16, %s2257_s19  ;;  %p2265_p3 = scmp.lt.s32.totalorder %s426_s16, %s426_s16 }
 0x120   : > { %p2266_p13 = scmp.lt.s32.totalorder %s2264_s12, %s2257_s19 }
 0x121   : > { %p2260_p5 = pnand %p2258_p0, %p3179_p8 }
 0x122   : > { %p2267_p2 = por %p2266_p13, %p2265_p3 }
 0x123   : > { %p2261_p11 = pneg %p2260_p5 }
 0x125   : > { %p2268_p4 = pnand %p2267_p2, %p2261_p11 }
 0x127   : > { %2271 = shalt.err (!%p2268_p4)
}
 0x128   : > { %1887 = dma.hbm_to_vmem [thread:$0]  (!%p3180_p6), %s3185_s1, 16, %s426_s16, [#allocation18]  }
 0x129   : > { %s3186_s2 = sshll.u32 %s2704_s8, 2  ;;  %s1714_s15 = sshll.u32 %s2430_s21, 8 }
 0x12a   : > { %s440_s11 = scalar_lea.vmem [#allocation5], %s3186_s2  ;;  %s3187_s14 = sld [smem:[#allocation47_spill]] }
 0x12b   : > { %s447_s10 = sshll.u32 %s440_s11, 4  ;;  %s437_s3 = scalar_lea.sflag [#allocation6], %s2704_s8  ;;  %s2857_s10 = int_to_ptr.vmem [resolvable:$true] %s447_s10 }
 0x12c   : > { %s2272_s22 = scalar_lea.hbm %s2834_s7, 64  ;;  %p3188_p1 = scmp.ne.s32.totalorder %s3177_s25, 0 }
 0x12d   : > { %p2273_p8 = scmp.ne.s32.totalorder %s2834_s7, %s2272_s22  ;;  %s2277_s16 = scalar_lea.hbm %s3105_s0, 128 }
 0x12e   : > { %p2278_p6 = scmp.lt.u32.totalorder %s2834_s7, %s3105_s0  ;;  %p2279_p9 = scmp.lt.u32.totalorder %s2277_s16, %s2272_s22 }
 0x12f   : > { %p2275_p12 = pnand %p2273_p8, %p3188_p1  ;;  %p2281_p0 = scmp.lt.u32.totalorder %s2272_s22, %s2834_s7 }
 0x130   : > { %s2862_s28 = scalar_lea.hbm %s3187_s14, %s1714_s15  ;;  %p2280_p10 = por %p2279_p9, %p2278_p6 }
 0x131   : > { %p2276_p7 = pneg %p2275_p12 }
 0x132   : > { %p2282_p5 = por %p2281_p0, %p2280_p10 }
 0x134   : > { %p2283_p11 = pnand %p2282_p5, %p2276_p7 }
 0x136   : > { %2286 = shalt.err (!%p2283_p11)
}
 0x137   : > { %s2287_s8 = scalar_lea.vmem %s2857_s10, 64  ;;  %s2447_s2 = smov [#allocation5]  }
 0x138   : > { %p2288_p3 = scmp.ne.s32.totalorder %s2857_s10, %s2287_s8  ;;  %s2292_s11 = sshll.u32 %s2447_s2, 4  ;;  %s2293_s11 = int_to_ptr.vmem [resolvable:$false] %s2292_s11 }
 0x139   : > { %s2294_s15 = scalar_lea.vmem %s2293_s11, 128  ;;  %p2295_p4 = scmp.lt.s32.totalorder %s2857_s10, %s2293_s11 }
 0x13a   : > { %p2290_p13 = pnand %p2288_p3, %p3188_p1  ;;  %p2296_p8 = scmp.lt.s32.totalorder %s2294_s15, %s2287_s8 }
 0x13c   : > { %p2291_p2 = pneg %p2290_p13  ;;  %p2297_p12 = por %p2296_p8, %p2295_p4 }
 0x13e   : > { %p2298_p6 = pnand %p2297_p12, %p2291_p2 }
 0x140   : > { %2301 = shalt.err (!%p2298_p6)
}
 0x141   : > { %p3189_p7 = scmp.ne.s32.totalorder %s3175_s24, 0  ;;  %s2302_s30 = scalar_lea.hbm %s2862_s28, 256 }
 0x142   : > { %p2303_p9 = scmp.ne.s32.totalorder %s2862_s28, %s2302_s30  ;;  %s2307_s19 = scalar_lea.hbm %s3187_s14, 512 }
 0x143   : > { %1891 = dma.hbm_to_vmem [thread:$0]  (!%p3189_p7), %s2834_s7, 64, %s2857_s10, %s437_s3  }
 0x144   : > { %p2305_p10 = pnand %p2303_p9, %p3188_p1  ;;  %p2308_p5 = scmp.lt.u32.totalorder %s2862_s28, %s3187_s14 }
 0x145   : > { %p2309_p11 = scmp.lt.u32.totalorder %s2307_s19, %s2302_s30  ;;  %p2311_p13 = scmp.lt.u32.totalorder %s2302_s30, %s2862_s28 }
 0x146   : > { %p2306_p0 = pneg %p2305_p10 }
 0x147   : > { %p2310_p3 = por %p2309_p11, %p2308_p5 }
 0x149   : > { %p2312_p2 = por %p2311_p13, %p2310_p3 }
 0x14b   : > { %p2313_p4 = pnand %p2312_p2, %p2306_p0 }
 0x14d   : > { %2316 = shalt.err (!%p2313_p4)
}
 0x14e   : > { %s2317_s7 = scalar_lea.vmem %s2759_s20, 256  ;;  %s2448_s10 = smov [#allocation22]  }
 0x14f   : > { %p2318_p8 = scmp.ne.s32.totalorder %s2759_s20, %s2317_s7  ;;  %s2322_s3 = sshll.u32 %s2448_s10, 4  ;;  %s2323_s3 = int_to_ptr.vmem [resolvable:$false] %s2322_s3 }
 0x150   : > { %s2324_s4 = scalar_lea.vmem %s2323_s3, 512  ;;  %p2325_p9 = scmp.lt.s32.totalorder %s2759_s20, %s2323_s3 }
 0x151   : > { %p2320_p12 = pnand %p2318_p8, %p3188_p1  ;;  %p2326_p10 = scmp.lt.s32.totalorder %s2324_s4, %s2317_s7 }
 0x153   : > { %p2321_p6 = pneg %p2320_p12  ;;  %p2327_p5 = por %p2326_p10, %p2325_p9 }
 0x155   : > { %p2328_p11 = pnand %p2327_p5, %p2321_p6 }
 0x157   : > { %2331 = shalt.err (!%p2328_p11)
}
 0x158   : > { %1897 = dma.hbm_to_vmem [thread:$0]  (!%p3189_p7), %s2862_s28, 256, %s2759_s20, %s2727_s5, %s3182_s29, %s3182_s29, %s3181_s9  }
 0x159   : > { %s3190_s25 = sld [smem:[#allocation35_spill]] }
 0x15f   : > { %p3191_p1 = scmp.ne.s32.totalorder %s3190_s25, 0 }
 0x160   : > { %s2914_s17 = sand.u32 (!%p3191_p1), 1, %s2418_s18   ;;  %p3192_p0 = scmp.ne.s32.totalorder (!%p3191_p1), %s3170_s13, 0 }
 0x161   : > { %496 = sbr.rel (%p3191_p1) target bundleno = 1715 (0x6b3), region = 64  ;;  %s1663_s8 = sshll.u32 (!%p3191_p1), %s2914_s17, 2 }
 0x162   : > { %s499_s2 = scalar_lea.sflag (!%p3191_p1), [#allocation6], %s2914_s17  ;;  %s2918_s11 = scalar_lea.vmem (!%p3191_p1), [#allocation5], %s1663_s8 }
 0x168   : > { %2385 = dma.done.wait (%p3192_p0), %s499_s2, 64  }
 0x169   : > { %2387 = vsyncadd (%p3192_p0), %s499_s2, 4294967232  ;;  %p3193_p7 = scmp.eq.s32.totalorder %s2549_s23, 0 }
 0x16b   : > { %2389 = dma.done.wait (%p3193_p7), [#allocation9], 512   ;;  %p3194_p3 = pmov %p3193_p7 }
 0x16d   : > { %2391 = vsyncadd (%p3194_p3), [#allocation9], 4294966784  ;;  %p3195_p13 = pmov %p3194_p3 }
 0x16e   : > { %p3196_p2 = pmov %p3194_p3 }
 0x16f   : > { %2393 = dma.done.wait (%p3195_p13), [#allocation12], 512  }
 0x170   : > { %2395 = vsyncadd (%p3196_p2), [#allocation12], 4294966784  ;;  %p3197_p4 = pmov %p3196_p2 }
 0x171   : > { %p3198_p8 = pmov %p3196_p2 }
 0x172   : > { %2397 = dma.done.wait (%p3197_p4), [#allocation15], 32  }
 0x173   : > { %2399 = vsyncadd (%p3198_p8), [#allocation15], 4294967264  ;;  %p3199_p12 = pmov %p3196_p2 }
 0x174   : > { %p3200_p6 = pmov %p3196_p2 }
 0x175   : > { %2401 = dma.done.wait (%p3199_p12), [#allocation18], 32  }
 0x176   : > { %2403 = vsyncadd (%p3200_p6), [#allocation18], 4294967264  ;;  %s539_s5 = sand.u32 1, %s2549_s23   ;;  %s543_s20 = scalar_lea.vmem [#allocation20], %s1663_s8 }
 0x177   : > { %s540_s24 = scalar_lea.sflag [#allocation21], %s539_s5 }
 0x178   : > { %2405 = dma.done.wait (%p3192_p0), %s540_s24, 320  }
 0x179   : > { %2407 = vsyncadd (%p3192_p0), %s540_s24, 4294966976  ;;  %v2449_v0 = vmov 0.0   ;;  %vm2450_vm0 = vmmov 0   ;;  %v1986_v1 = vld [vmem:[#allocation10] sm:$0xff]   ;;  %v1987_v2 = vld [vmem:[#allocation10 + $0x8] sm:$0xff]   ;;  %vm630_vm1 = vcmask 261120  }
 0x17a   : > { %1743 = vmatprep.subr.bf16.mxu0 %v2449_v0  ;;  %1747 = vmatprep.mubr.msk.bf16.mxu0 %vm2450_vm0, %v2449_v0  ;;  %v606_v3 = vld [vmem:[%s2918_s11] sm:$0xf]  ;;  %v1988_v4 = vld [vmem:[#allocation8] sm:$0xff]   ;;  %v1990_v5 = vld [vmem:[%s543_s20] ss:$0 sps:$4 sm:$0xff]   ;;  %s2451_s23 = smov 8  }
 0x17b   : > { %1751 = vmatprep.subr.bf16.mxu1 %v2449_v0  ;;  %1755 = vmatprep.mubr.msk.bf16.mxu1 %vm2450_vm0, %v2449_v0  ;;  %v1989_v6 = vld [vmem:[#allocation8 + $0x8] sm:$0xff]   ;;  %v781_v7 = vld [vmem:[%s2918_s11] sm:$0xf]  ;;  %v1991_v8 = vld [vmem:[#allocation11] sm:$0xff]   ;;  %s1673_s13 = sshll.u32 %s2914_s17, 4  ;;  %vm747_vm2 = vcmask 64512  }
 0x17c   : > { %1744 = vmatpush3.bf16.msra.mxu0 %v1986_v1  ;;  %745 = vrot.lane.b32.xlu0 %v1990_v5, %s2451_s23  ;;  %v1992_v9 = vld [vmem:[#allocation11 + $0x8] sm:$0xff]   ;;  %s2966_s9 = scalar_lea.vmem [#allocation22], %s1673_s13  ;;  %v1675_v10 = vld [vmem:[#allocation16] ss:$0 sm:$0xff]  ;;  %vm752_vm3 = vcmask 109568   ;;  %s2452_s29 = smov 112  }
 0x17d   : > { %1745 = vmatprep.subr.bf16.mxu0 %v2449_v0  ;;  %1752 = vmatpush3.bf16.msra.mxu1 %v1991_v8  ;;  %s2453_s28 = smov 120   ;;  %v1993_v19 = vld [vmem:[%s2966_s9] ss:$0 sps:$4 sm:$0xff]   ;;  %s2454_s15 = smov 104   ;;  %v1994_v23 = vld [vmem:[%s2966_s9 + $0x4] ss:$0 sps:$4 sm:$0xff]  }
 0x17e   : > { %1753 = vmatprep.subr.bf16.mxu1 %v2449_v0  ;;  %v1684_v20 = vld [vmem:[#allocation14] ss:$0 sm:$0xff]  ;;  %vm862_vm4 = vcmask 113664   ;;  %v1995_v30 = vld [vmem:[%s2966_s9 + $0x8] ss:$0 sps:$4 sm:$0xff]   ;;  %vm738_vm5 = vcmask 257024  }
 0x17f   : > { %v1996_v32 = vld [vmem:[%s2966_s9 + $0xc] ss:$0 sps:$4 sm:$0xff]   ;;  %v1679_v33 = vld [vmem:[#allocation17] ss:$0 sm:$0xff]  ;;  %vm922_vm6 = vcmask 1043456   ;;  %s2455_s30 = smov 16  }
 0x180   : > { %1746 = vmatpush3.bf16.msra.mxu0 %v1987_v2  ;;  %s2456_s27 = smov 24   ;;  %s3201_s22 = sld [smem:[#allocation33_spill]]  ;;  %vm1097_vm7 = vcmask 130112   ;;  %vm1226_vm8 = vcmask 195712   ;;  %vm1355_vm9 = vcmask 261312  }
 0x181   : > { %1759 = vmatprep.subr.bf16.mxu0 %v2449_v0  ;;  %1754 = vmatpush3.bf16.msra.mxu1 %v1992_v9  ;;  %s1674_s19 = sshll.u32 %s2914_s17, 3  ;;  %s3202_s4 = sld [smem:[#allocation48_spill]] }
 0x182   : > { %1767 = vmatprep.subr.bf16.mxu1 %v2449_v0  ;;  %s600_s16 = scalar_lea.vmem [#allocation23], %s1674_s19  ;;  %s1427_s8 = scalar_lea.sflag [#allocation7], %s2914_s17 }
 0x183   : > { %1748 = vmatmul.mubr.msk.bf16.vlgmr.msra.gmra.mrb[0].mxu0 %vm630_vm1, %v606_v3  ;;  %s1441_s7 = sshll.u32 %s600_s16, 4  ;;  %p3203_p10 = scmp.ne.s32.totalorder %s3171_s26, 0  ;;  %s3057_s7 = int_to_ptr.vmem [resolvable:$true] %s1441_s7 }
 0x184   : > { %1760 = vmatpush3.bf16.msra.mxu0 %v1988_v4  ;;  %1763 = vmatprep.mubr.msk.bf16.mxu0 %vm2450_vm0, %v2449_v0  ;;  %s2332_s2 = scalar_lea.vmem %s3057_s7, 128  ;;  %s2457_s11 = smov [#allocation23]  }
 0x185   : > { %1761 = vmatprep.subr.bf16.mxu0 %v2449_v0  ;;  %1756 = vmatmul.mubr.msk.bf16.vlgmr.msra.gmra.mrb[0].mxu1 %vm630_vm1, %v606_v3  ;;  %p2333_p9 = scmp.ne.s32.totalorder %s3057_s7, %s2332_s2  ;;  %s2336_s5 = sshll.u32 %s2457_s11, 4  ;;  %s2337_s5 = int_to_ptr.vmem [resolvable:$false] %s2336_s5 }
 0x186   : > { %1769 = vmatprep.mubr.msk.bf16.mxu1 %vm2450_vm0, %v2449_v0  ;;  %s1711_s12 = sshll.u32 %s3201_s22, 7  ;;  %s2338_s24 = scalar_lea.vmem %s2337_s5, 256 }
 0x187   : > { %s3055_s25 = scalar_lea.hbm %s3202_s4, %s1711_s12  ;;  %p2334_p5 = pnand %p2333_p9, %p3203_p10 }
 0x188   : > { %1762 = vmatpush3.bf16.msra.mxu0 %v1989_v6  ;;  %p2339_p1 = scmp.lt.s32.totalorder %s3057_s7, %s2337_s5  ;;  %p2340_p0 = scmp.lt.s32.totalorder %s2338_s24, %s2332_s2 }
 0x189   : > { %1773 = vmatprep.subr.bf16.mxu0 %v2449_v0  ;;  %p2335_p11 = pneg %p2334_p5 }
 0x18a   : > { %p2341_p7 = por %p2340_p0, %p2339_p1 }
 0x18b   : > { %1764 = vmatmul.mubr.msk.bf16.vlgmr.msra.gmra.mrb[4].mxu0 %vm630_vm1, %v781_v7 }
 0x18c   : > { %1775 = vmatprep.mubr.msk.bf16.mxu0 %vm2450_vm0, %v2449_v0  ;;  %p2342_p3 = pnand %p2341_p7, %p2335_p11 }
 0x1ee   : > { %v746_v15 = vpop.permute.xlu0 %745 }
 0x256   : > { %v668_v11 = vpop.f32.mrb[0].mxu0 }
 0x257   : > { %v669_v12 = vadd.f32 %v1675_v10, %v668_v11  ;;  %v1749_v13 = vpop.f32.mrb[1].mxu0 }
 0x258   : > { %v671_v14 = vpop.f32.mrb[2].mxu0  ;;  %v731_v34 = vpop.f32.mrb[0].mxu1 }
 0x259   : > { %v740_v16 = vpack.c.bf16 %v669_v12, %v669_v12  ;;  %v1750_v17 = vpop.f32.mrb[3].mxu0  ;;  %v732_v35 = vadd.f32 %v1679_v33, %v731_v34  ;;  %v1757_v36 = vpop.f32.mrb[1].mxu1 }
 0x25a   : > { %v734_v37 = vpop.f32.mrb[2].mxu1 }
 0x25b   : > { %v750_v18 = vsel %vm747_vm2, %v740_v16, %v746_v15  ;;  %762 = vrot.lane.b32.xlu1 %v740_v16, %s2452_s29  ;;  %755 = vrot.lane.b32.xlu0 %v740_v16, %s2453_s28  ;;  %v737_v38 = vpack.c.bf16 %v732_v35, %v732_v35  ;;  %v1758_v39 = vpop.f32.mrb[3].mxu1 }
 0x25c   : > { %753 = vst.msk [vmem:[#allocation2] sm:$0xf] %vm752_vm3, %v750_v18 }
 0x25d   : > { %739 = vst.msk [vmem:[#allocation3] sm:$0xf] %vm738_vm5, %v737_v38 }
 0x25e   : > { %v843_v21 = vpop.f32.mrb[4].mxu0 }
 0x25f   : > { %855 = vrot.lane.b32.xlu1 %v1993_v19, %s2451_s23  ;;  %769 = vrot.lane.b32.xlu0 %v740_v16, %s2454_s15  ;;  %v844_v22 = vadd.f32 %v1684_v20, %v843_v21  ;;  %v1765_v24 = vpop.f32.mrb[5].mxu0 }
 0x260   : > { %v846_v25 = vpop.f32.mrb[6].mxu0 }
 0x261   : > { %v849_v26 = vmul.f32 0.35355338, %v844_v22  ;;  %v1766_v27 = vpop.f32.mrb[7].mxu0 }
 0x263   : > { %v850_v28 = vpack.c.bf16 %v849_v26, %v849_v26  ;;  %v861_v29 = vld [vmem:[#allocation2] sm:$0xf]  ;;  %977 = vrot.lane.b32.xlu0 %v1994_v23, %s2451_s23 }
 0x264   : > { %v866_v31 = vsel %vm862_vm4, %v861_v29, 0  ;;  %v918_v63 = vld [vmem:[#allocation3] sm:$0xf] }
 0x265   : > { %1768 = vmatpush3.bf16.xpose.msra.mxu1 %v866_v31  ;;  %972 = vrot.lane.b32.xlu1 %v850_v28, %s2453_s28  ;;  %v924_v1 = vsel %vm922_vm6, %v918_v63, 0  ;;  %v1997_v12 = vld [vmem:[#allocation3] ss:$0 sps:$4 sm:$0xff]  }
 0x266   : > { %1779 = vmatprep.subr.bf16.mxu1 %v2449_v0  ;;  %1774 = vmatpush3.bf16.msra.mxu0 %v924_v1  ;;  %v1998_v22 = vld [vmem:[#allocation3] ss:$0 sps:$4 sm:$0xff]  }
 0x267   : > { %1106 = vrot.lane.b32.xlu0 %v1995_v30, %s2451_s23  ;;  %1785 = vmatprep.subr.bf16.mxu0 %v2449_v0  ;;  %v1999_v24 = vld [vmem:[#allocation3] ss:$0 sps:$4 sm:$0xff]  }
 0x269   : > { %1101 = vrot.lane.b32.xlu1 %v850_v28, %s2452_s29 }
 0x26b   : > { %1235 = vrot.lane.b32.xlu0 %v1996_v32, %s2451_s23 }
 0x26d   : > { %1230 = vrot.lane.b32.xlu1 %v850_v28, %s2454_s15 }
 0x2cd   : > { %v763_v40 = vpop.permute.xlu1 %762  ;;  %v756_v41 = vpop.permute.xlu0 %755 }
 0x2ce   : > { %v765_v42 = vsel %vm747_vm2, %v763_v40, %v746_v15  ;;  %v758_v43 = vsel %vm747_vm2, %v756_v41, %v746_v15 }
 0x2cf   : > { %768 = vst.msk [vmem:[#allocation2 + $0x8] sm:$0xf] %vm752_vm3, %v765_v42  ;;  %761 = vst.msk [vmem:[#allocation2 + $0x4] sm:$0xf] %vm752_vm3, %v758_v43 }
 0x2d1   : > { %v856_v44 = vpop.permute.xlu1 %855  ;;  %v770_v45 = vpop.permute.xlu0 %769 }
 0x2d2   : > { %v860_v46 = vsel %vm747_vm2, %v850_v28, %v856_v44  ;;  %v772_v47 = vsel %vm747_vm2, %v770_v45, %v746_v15 }
 0x2d3   : > { %775 = vst.msk [vmem:[#allocation2 + $0xc] sm:$0xf] %vm752_vm3, %v772_v47  ;;  %1770 = vmatmul.mubr.msk.bf16.vlgmr.msra.gmra.mrb[4].mxu1 %vm862_vm4, %v860_v46 }
 0x2d4   : > { %1781 = vmatprep.mubr.msk.bf16.mxu1 %vm2450_vm0, %v2449_v0 }
 0x2d5   : > { %v978_v50 = vpop.permute.xlu0 %977 }
 0x2d6   : > { %v983_v48 = vld [vmem:[#allocation2 + $0x4] sm:$0xf]  ;;  %v1112_v53 = vld [vmem:[#allocation2 + $0x8] sm:$0xf] }
 0x2d7   : > { %v987_v49 = vsel %vm862_vm4, %v983_v48, 0  ;;  %v973_v51 = vpop.permute.xlu1 %972  ;;  %v1116_v54 = vsel %vm862_vm4, %v1112_v53, 0 }
 0x2d8   : > { %1780 = vmatpush3.bf16.xpose.msra.mxu1 %v987_v49  ;;  %v981_v52 = vsel %vm747_vm2, %v973_v51, %v978_v50 }
 0x2d9   : > { %1791 = vmatprep.subr.bf16.mxu1 %v2449_v0  ;;  %v1107_v55 = vpop.permute.xlu0 %1106 }
 0x2da   : > { %v1241_v58 = vld [vmem:[#allocation2 + $0xc] sm:$0xf] }
 0x2db   : > { %v1102_v56 = vpop.permute.xlu1 %1101  ;;  %v1245_v59 = vsel %vm862_vm4, %v1241_v58, 0 }
 0x2dc   : > { %v1110_v57 = vsel %vm747_vm2, %v1102_v56, %v1107_v55 }
 0x2dd   : > { %v1236_v60 = vpop.permute.xlu0 %1235 }
 0x2df   : > { %1782 = vmatmul.mubr.msk.bf16.vlgmr.msra.gmra.mrb[8].mxu1 %vm862_vm4, %v981_v52  ;;  %v1231_v61 = vpop.permute.xlu1 %1230 }
 0x2e0   : > { %1792 = vmatpush3.bf16.xpose.msra.mxu1 %v1116_v54  ;;  %1793 = vmatprep.mubr.msk.bf16.mxu1 %vm2450_vm0, %v2449_v0  ;;  %v1239_v62 = vsel %vm747_vm2, %v1231_v61, %v1236_v60 }
 0x2e1   : > { %1803 = vmatprep.subr.bf16.mxu1 %v2449_v0 }
 0x2e7   : > { %1794 = vmatmul.mubr.msk.bf16.vlgmr.msra.gmra.mrb[12].mxu1 %vm862_vm4, %v1110_v57 }
 0x2e8   : > { %1804 = vmatpush3.bf16.xpose.msra.mxu1 %v1245_v59  ;;  %1805 = vmatprep.mubr.msk.bf16.mxu1 %vm2450_vm0, %v2449_v0 }
 0x2e9   : > { %1815 = vmatprep.subr.bf16.mxu1 %v2449_v0 }
 0x2ef   : > { %1806 = vmatmul.mubr.msk.bf16.vlgmr.msra.gmra.mrb[16].mxu1 %vm862_vm4, %v1239_v62 }
 0x2f0   : > { %1819 = vmatprep.mubr.msk.bf16.mxu1 %vm2450_vm0, %v2449_v0 }
 0x3a6   : > { %v902_v2 = vpop.f32.mrb[4].mxu1 }
 0x3a7   : > { %v1771_v3 = vpop.f32.mrb[5].mxu1  ;;  %v908_v4 = vsel %vm747_vm2, %v902_v2, -inf }
 0x3a8   : > { %909 = vmax.xlane.f32.xlu1 %v908_v4  ;;  %v905_v5 = vpop.f32.mrb[6].mxu1 }
 0x3a9   : > { %v1772_v6 = vpop.f32.mrb[7].mxu1 }
 0x3b2   : > { %v1023_v7 = vpop.f32.mrb[8].mxu1 }
 0x3b3   : > { %v1029_v8 = vsel %vm747_vm2, %v1023_v7, -inf  ;;  %v1783_v9 = vpop.f32.mrb[9].mxu1 }
 0x3b4   : > { %1030 = vmax.xlane.f32.xlu0 %v1029_v8  ;;  %v1026_v10 = vpop.f32.mrb[10].mxu1 }
 0x3b5   : > { %v1784_v11 = vpop.f32.mrb[11].mxu1 }
 0x3b9   : > { %1172 = vrot.lane.b32.xlu1 %v1997_v12, %s2452_s29 }
 0x3ba   : > { %v1152_v13 = vpop.f32.mrb[12].mxu1 }
 0x3bb   : > { %v1158_v14 = vsel %vm747_vm2, %v1152_v13, -inf  ;;  %v1795_v15 = vpop.f32.mrb[13].mxu1 }
 0x3bc   : > { %1159 = vmax.xlane.f32.xlu0 %v1158_v14  ;;  %v1155_v16 = vpop.f32.mrb[14].mxu1  ;;  %v2000_v14 = vld [vmem:[#allocation13] sm:$0xff]   ;;  %v2001_v15 = vld [vmem:[#allocation13 + $0x8] sm:$0xff]  }
 0x3bd   : > { %v1796_v17 = vpop.f32.mrb[15].mxu1  ;;  %1816 = vmatpush3.bf16.msra.mxu1 %v2000_v14 }
 0x3be   : > { %1817 = vmatprep.subr.bf16.mxu1 %v2449_v0 }
 0x3c1   : > { %1818 = vmatpush3.bf16.msra.mxu1 %v2001_v15 }
 0x3c2   : > { %v1281_v18 = vpop.f32.mrb[16].mxu1 }
 0x3c3   : > { %v1807_v19 = vpop.f32.mrb[17].mxu1  ;;  %v1287_v23 = vsel %vm747_vm2, %v1281_v18, -inf }
 0x3c4   : > { %v1284_v20 = vpop.f32.mrb[18].mxu1 }
 0x3c5   : > { %v1808_v21 = vpop.f32.mrb[19].mxu1 }
 0x3d2   : > { %1043 = vrot.lane.b32.xlu0 %v1998_v22, %s2453_s28 }
 0x3dd   : > { %1288 = vmax.xlane.f32.xlu1 %v1287_v23 }
 0x3ee   : > { %1301 = vrot.lane.b32.xlu1 %v1999_v24, %s2454_s15 }
 0x435   : > { %v910_v25 = vpop.xlane.xlu1 %909 }
 0x436   : > { %v911_v26 = vsub.f32 %v902_v2, %v910_v25 }
 0x438   : > { %v912_v27 = vmul.f32 1.442695, %v911_v26  ;;  %v1706_v26 = vld [vmem:[#allocation19] ss:$0 sm:$0xff] }
 0x439   : > { %v1173_v39 = vpop.permute.xlu1 %1172 }
 0x43a   : > { %2002 = vpow2.f32 %v912_v27  ;;  %v1178_v42 = vsel %vm922_vm6, %v1173_v39, 0 }
 0x441   : > { %v1031_v28 = vpop.xlane.xlu0 %1030 }
 0x442   : > { %v1032_v29 = vsub.f32 %v1023_v7, %v1031_v28 }
 0x444   : > { %v2003_v30 = vpop.eup %2002  ;;  %v1033_v31 = vmul.f32 1.442695, %v1032_v29 }
 0x445   : > { %v917_v32 = vpack.c.bf16 %v2003_v30, %v2003_v30  ;;  %v914_v54 = vsel %vm747_vm2, %v2003_v30, 0.0 }
 0x446   : > { %2004 = vpow2.f32 %v1033_v31 }
 0x447   : > { %1776 = vmatmul.mubr.msk.bf16.vlgmr.msra.gmra.mrb[8].mxu0 %vm747_vm2, %v917_v32 }
 0x448   : > { %1787 = vmatprep.mubr.msk.bf16.mxu0 %vm2450_vm0, %v2449_v0 }
 0x449   : > { %v1160_v33 = vpop.xlane.xlu0 %1159 }
 0x44a   : > { %v1161_v34 = vsub.f32 %v1152_v13, %v1160_v33 }
 0x44c   : > { %v1162_v35 = vmul.f32 1.442695, %v1161_v34 }
 0x44d   : > { %v1044_v36 = vpop.permute.xlu0 %1043 }
 0x44e   : > { %2006 = vpow2.f32 %v1162_v35  ;;  %v1049_v37 = vsel %vm922_vm6, %v1044_v36, 0 }
 0x44f   : > { %1786 = vmatpush3.bf16.msra.mxu0 %v1049_v37 }
 0x450   : > { %v2005_v38 = vpop.eup %2004  ;;  %1797 = vmatprep.subr.bf16.mxu0 %v2449_v0 }
 0x451   : > { %v1035_v40 = vsel %vm747_vm2, %v2005_v38, 0.0  ;;  %v1038_v41 = vpack.c.bf16 %v2005_v38, %v2005_v38 }
 0x452   : > { %1036 = vadd.xlane.f32.xlu0 %v1035_v40 }
 0x453   : > { %1788 = vmatmul.mubr.msk.bf16.vlgmr.msra.gmra.mrb[12].mxu0 %vm747_vm2, %v1038_v41 }
 0x454   : > { %1798 = vmatpush3.bf16.msra.mxu0 %v1178_v42  ;;  %1799 = vmatprep.mubr.msk.bf16.mxu0 %vm2450_vm0, %v2449_v0 }
 0x455   : > { %1809 = vmatprep.subr.bf16.mxu0 %v2449_v0 }
 0x458   : > { %v2007_v43 = vpop.eup %2006 }
 0x459   : > { %v1164_v44 = vsel %vm747_vm2, %v2007_v43, 0.0  ;;  %v1167_v45 = vpack.c.bf16 %v2007_v43, %v2007_v43 }
 0x45a   : > { %1165 = vadd.xlane.f32.xlu1 %v1164_v44 }
 0x45b   : > { %1800 = vmatmul.mubr.msk.bf16.vlgmr.msra.gmra.mrb[16].mxu0 %vm747_vm2, %v1167_v45 }
 0x45c   : > { %1811 = vmatprep.mubr.msk.bf16.mxu0 %vm2450_vm0, %v2449_v0 }
 0x46a   : > { %v1289_v46 = vpop.xlane.xlu1 %1288 }
 0x46b   : > { %v1290_v47 = vsub.f32 %v1281_v18, %v1289_v46 }
 0x46d   : > { %v1291_v48 = vmul.f32 1.442695, %v1290_v47 }
 0x46e   : > { %v1302_v49 = vpop.permute.xlu1 %1301 }
 0x46f   : > { %2008 = vpow2.f32 %v1291_v48  ;;  %v1307_v50 = vsel %vm922_vm6, %v1302_v49, 0 }
 0x470   : > { %1810 = vmatpush3.bf16.msra.mxu0 %v1307_v50 }
 0x479   : > { %v2009_v51 = vpop.eup %2008 }
 0x47a   : > { %v1293_v52 = vsel %vm747_vm2, %v2009_v51, 0.0  ;;  %v1296_v53 = vpack.c.bf16 %v2009_v51, %v2009_v51 }
 0x47b   : > { %1294 = vadd.xlane.f32.xlu0 %v1293_v52 }
 0x47c   : > { %1812 = vmatmul.mubr.msk.bf16.vlgmr.msra.gmra.mrb[20].mxu0 %vm747_vm2, %v1296_v53 }
 0x47f   : > { %915 = vadd.xlane.f32.xlu0 %v914_v54 }
 0x4df   : > { %v1037_v55 = vpop.xlane.xlu0 %1036 }
 0x4e7   : > { %v1166_v1 = vpop.xlane.xlu1 %1165 }
 0x508   : > { %v1295_v56 = vpop.xlane.xlu0 %1294 }
 0x50c   : > { %v916_v57 = vpop.xlane.xlu0 %915 }
 0x50d   : > { %2010 = vrcp.f32 %v916_v57 }
 0x50e   : > { %2012 = vrcp.f32 %v1037_v55 }
 0x50f   : > { %2014 = vrcp.f32 %v1166_v1 }
 0x510   : > { %2016 = vrcp.f32 %v1295_v56 }
 0x517   : > { %v2011_v58 = vpop.eup %2010 }
 0x518   : > { %v2013_v2 = vpop.eup %2012 }
 0x519   : > { %v2015_v8 = vpop.eup %2014 }
 0x51a   : > { %v960_v59 = vpop.f32.mrb[8].mxu0  ;;  %v2017_v16 = vpop.eup %2016 }
 0x51b   : > { %v967_v60 = vmul.f32 %v2011_v58, %v960_v59  ;;  %v1777_v61 = vpop.f32.mrb[9].mxu0 }
 0x51c   : > { %v963_v62 = vpop.f32.mrb[10].mxu0 }
 0x51d   : > { %968 = vst.msk [vmem:[#allocation4] sm:$0xff] %vm747_vm2, %v967_v60  ;;  %v1778_v63 = vpop.f32.mrb[11].mxu0 }
 0x526   : > { %v1085_v3 = vpop.f32.mrb[12].mxu0 }
 0x527   : > { %v1092_v4 = vmul.f32 %v2013_v2, %v1085_v3  ;;  %v1789_v5 = vpop.f32.mrb[13].mxu0 }
 0x528   : > { %v1088_v6 = vpop.f32.mrb[14].mxu0 }
 0x529   : > { %1094 = vrot.lane.b32.xlu1 %v1092_v4, %s2451_s23  ;;  %v1790_v7 = vpop.f32.mrb[15].mxu0 }
 0x52e   : > { %v1214_v9 = vpop.f32.mrb[16].mxu0 }
 0x52f   : > { %v1221_v10 = vmul.f32 %v2015_v8, %v1214_v9  ;;  %v1801_v11 = vpop.f32.mrb[17].mxu0 }
 0x530   : > { %v1217_v12 = vpop.f32.mrb[18].mxu0 }
 0x531   : > { %1223 = vrot.lane.b32.xlu0 %v1221_v10, %s2455_s30  ;;  %v1802_v13 = vpop.f32.mrb[19].mxu0 }
 0x54f   : > { %v1343_v17 = vpop.f32.mrb[20].mxu0 }
 0x550   : > { %v1350_v18 = vmul.f32 %v2017_v16, %v1343_v17  ;;  %v1813_v19 = vpop.f32.mrb[21].mxu0 }
 0x551   : > { %v1346_v20 = vpop.f32.mrb[22].mxu0 }
 0x552   : > { %1352 = vrot.lane.b32.xlu1 %v1350_v18, %s2456_s27  ;;  %v1814_v21 = vpop.f32.mrb[23].mxu0 }
 0x59b   : > { %v1095_v22 = vpop.permute.xlu1 %1094 }
 0x59c   : > { %1098 = vst.msk [vmem:[#allocation4] sm:$0xff] %vm1097_vm7, %v1095_v22 }
 0x5a3   : > { %v1224_v23 = vpop.permute.xlu0 %1223 }
 0x5a4   : > { %1227 = vst.msk [vmem:[#allocation4] sm:$0xff] %vm1226_vm8, %v1224_v23 }
 0x5c4   : > { %v1353_v24 = vpop.permute.xlu1 %1352 }
 0x5c5   : > { %1356 = vst.msk [vmem:[#allocation4] sm:$0xff] %vm1355_vm9, %v1353_v24 }
 0x5cc   : > { %v1357_v0 = vld [vmem:[#allocation4] sm:$0xff] }
 0x5cd   : > { %v1358_v25 = vpack.c.bf16 %v1357_v0, %v1357_v0 }
 0x5cf   : > { %1820 = vmatmul.mubr.msk.bf16.vlgmr.msra.gmra.mrb[20].mxu1 %vm630_vm1, %v1358_v25 }
 0x6a2   : > { %v1419_v27 = vpop.f32.mrb[20].mxu1 }
 0x6a3   : > { %v1420_v28 = vadd.f32 %v1706_v26, %v1419_v27  ;;  %v1821_v29 = vpop.f32.mrb[21].mxu1 }
 0x6a4   : > { %v1422_v30 = vpop.f32.mrb[22].mxu1 }
 0x6a5   : > { %v1822_v31 = vpop.f32.mrb[23].mxu1  ;;  %1425 = vst.msk [vmem:[%s600_s16] sm:$0xff] %vm630_vm1, %v1420_v28 }
 0x6a6   : > { %2345 = shalt.err (!%p2342_p3)
}
 0x6a7   : > { %s2346_s17 = scalar_lea.hbm %s3055_s25, 128  ;;  %s2350_s13 = scalar_lea.hbm %s3202_s4, 256 }
 0x6a8   : > { %p2347_p13 = scmp.ne.s32.totalorder %s3055_s25, %s2346_s17  ;;  %p2351_p8 = scmp.lt.u32.totalorder %s3055_s25, %s3202_s4 }
 0x6a9   : > { %p2352_p12 = scmp.lt.u32.totalorder %s2350_s13, %s2346_s17  ;;  %p2354_p9 = scmp.lt.u32.totalorder %s2346_s17, %s3055_s25 }
 0x6aa   : > { %p2348_p2 = pnand %p2347_p13, %p3203_p10 }
 0x6ab   : > { %p2353_p6 = por %p2352_p12, %p2351_p8 }
 0x6ac   : > { %p2349_p4 = pneg %p2348_p2 }
 0x6ad   : > { %p2355_p5 = por %p2354_p9, %p2353_p6 }
 0x6af   : > { %p2356_p11 = pnand %p2355_p5, %p2349_p4 }
 0x6b1   : > { %2359 = shalt.err (!%p2356_p11)
}
 0x6b2   : > { %1861 = dma.vmem_to_hbm [thread:$0]  (%p3203_p10), %s3057_s7, 128, %s3055_s25, %s1427_s8  }
 0x6b3 PF: > { %s3204_s28 = sld [smem:[#allocation31_spill]]  ;;  %s3205_s15 = sld [smem:[#allocation38_spill]] }
 0x6b4   : > { %s3206_s30 = sld [smem:[#allocation34_spill]] }
 0x6b9   : > { %s1453_s27 = sand.u32 1, %s3204_s28   ;;  %p3207_p1 = scmp.ne.s32.totalorder %s3205_s15, 0 }
 0x6ba   : > { %p3208_p0 = scmp.ge.s32.totalorder %s3206_s30, 2  ;;  %s1454_s22 = scalar_lea.sflag [#allocation7], %s1453_s27 }
 0x6bc   : > { %p1899_p7 = pnand %p3208_p0, %p3207_p1 }
 0x6be   : > { %2409 = dma.done.wait (!%p1899_p7), %s1454_s22, 128  }
 0x6bf   : > { %2411 = vsyncadd (!%p1899_p7), %s1454_s22, 4294967168  ;;  %s34_s22 = sadd.s32 1, %s3206_s30   ;;  %s3209_s19 = sld [smem:[#allocation32_spill]] }
 0x6c0   : > { %p31_p3 = scmp.ge.s32.totalorder %s34_s22, 4   ;;  %s3210_s26 = sld [smem:[#allocation37_spill]] }
 0x6c1   : > { %s3211_s12 = sld [smem:[#allocation36_spill]]  ;;  %s3212_s17 = smov %s2418_s18 }
 0x6c2   : > { %s3215_s20 = smov %s2430_s21  ;;  %33 = sbr.rel (!%p31_p3) target bundleno = 23 (0x17), region = 179 }
 0x6c5   : > { %s3213_s18 = smov %s3209_s19 }
 0x6c6   : > { %s3214_s19 = smov %s3210_s26 }
 0x6c7   : > { %s3216_s21 = smov %s3211_s12 }
 0x6c9   :  { %1459 = vsyncpa [#allocation6], 1 }
 0x6ca   :  { %1461 = vsyncpa [#allocation6 + $0x1], 1 }
 0x6cb   :  { %1462 = vsyncpa [#allocation9], 1 }
 0x6cc   :  { %1463 = vsyncpa [#allocation12], 1 }
 0x6cd   :  { %1464 = vsyncpa [#allocation15], 1 }
 0x6ce   :  { %1465 = vsyncpa [#allocation18], 1 }
 0x6cf   :  { %1466 = vsyncpa [#allocation21], 1 }
 0x6d0   :  { %1468 = vsyncpa [#allocation21 + $0x1], 1 }
 0x6d1   :  { %1469 = vsyncpa [#allocation7], 1 }
 0x6d2   :  { %1471 = vsyncpa [#allocation7 + $0x1], 1 }

</bundles_post_ra>
